<compile_context>
chip_gen: v6e
topology: v6e:2x2x1
jax: 0.10.0
libtpu: 0.0.40
codegen_flags: <defaults>
</compile_context>

<pallas_src>
import jax
import jax.numpy as jnp
from jax.experimental import pallas as pl
from jax.experimental.pallas import tpu as pltpu

NODE_FEAT = 142       # residue_name + atom_type + record_symbol + rdkit one-hots
NODE_FEAT_PAD = 256   # padded to a 128-multiple for lane-dense MXU operands
EDGE_FEAT = 5         # bond_feature (projection hoisted out of the kernel)
HIDDEN = 128
EMB = 100
EMB_PAD = 128         # padded to 128 (zero columns, exact)
NUM_LAYERS = 3        # GraphEmbeddingModel internals not given; 3 GINEConv layers assumed
# GINEConv default eps = 0.0 (train_eps=False), so (1 + eps) * x == x.


def _gine_scoring_kernel(x_ref, eh_ref, src_ref, dst_ref, batch_ref,
                         wn_ref, bn_ref, w1_ref, b1_ref, w2_ref, b2_ref,
                         wr_ref, br_ref, wo_ref, bo_ref, out_ref):
    f32 = jnp.float32
    bf16 = jnp.bfloat16
    e = eh_ref.shape[0]
    n = x_ref.shape[0]
    g = out_ref.shape[0]

    # Rebuild 0/1 gather / scatter / pool matrices in-register from the int32
    # index vectors (no O(N*E) HBM traffic; 0/1 is exact in bf16).
    col_en = jax.lax.broadcasted_iota(jnp.int32, (e, n), 1)                 # [E, N] col ids
    src_oh = jnp.where(col_en == src_ref[...], 1.0, 0.0).astype(bf16)       # [E, N]
    row_ne = jax.lax.broadcasted_iota(jnp.int32, (n, e), 0)                 # [N, E] row ids
    dst_sc = jnp.where(row_ne == dst_ref[...], 1.0, 0.0).astype(bf16)       # [N, E]
    row_gn = jax.lax.broadcasted_iota(jnp.int32, (g, n), 0)                 # [G, N] row ids
    pool = jnp.where(row_gn == batch_ref[...], 1.0, 0.0).astype(bf16)       # [G, N]

    # Node input projection: [N,256]x[256,128], bf16 operands, f32 accumulate.
    h = jnp.dot(x_ref[...], wn_ref[...], preferred_element_type=f32) + bn_ref[...]
    h = jnp.maximum(h, 0.0)
    eh = eh_ref[...]                         # [E, 128] f32 (edge proj hoisted to wrapper)

    # GINEConv layers: x_i' = MLP( (1+eps)*x_i + sum_j ReLU(x_j + e_ij) ), eps = 0.
    for l in range(NUM_LAYERS):
        x_src = jnp.dot(src_oh, h.astype(bf16), preferred_element_type=f32)   # gather  [E,H]
        msg = jnp.maximum(x_src + eh, 0.0)                                     # ReLU(x_j + e_ij)
        agg = jnp.dot(dst_sc, msg.astype(bf16), preferred_element_type=f32)    # scatter [N,H]
        z = h + agg
        z = jnp.dot(z.astype(bf16), w1_ref[l], preferred_element_type=f32) + b1_ref[l]
        z = jnp.maximum(z, 0.0)
        z = jnp.dot(z.astype(bf16), w2_ref[l], preferred_element_type=f32) + b2_ref[l]
        h = jnp.maximum(z, 0.0)

    # Graph readout: sum-pool per graph, project to (padded) embedding, Linear(100,1).
    gsum = jnp.dot(pool, h.astype(bf16), preferred_element_type=f32)           # [G, H]
    emb = jnp.dot(gsum.astype(bf16), wr_ref[...], preferred_element_type=f32) + br_ref[...]
    out = jnp.sum(emb * wo_ref[...], axis=-1, keepdims=True) + bo_ref[...]     # [G, 1]
    out_ref[...] = out


def init_params(key):
    ks = jax.random.split(key, 8)
    s = 0.1
    return {
        "wn": s * jax.random.normal(ks[0], (NODE_FEAT, HIDDEN), jnp.float32),
        "bn": jnp.zeros((1, HIDDEN), jnp.float32),
        "we": s * jax.random.normal(ks[1], (EDGE_FEAT, HIDDEN), jnp.float32),
        "be": jnp.zeros((1, HIDDEN), jnp.float32),
        "w1": s * jax.random.normal(ks[2], (NUM_LAYERS, HIDDEN, HIDDEN), jnp.float32),
        "b1": jnp.zeros((NUM_LAYERS, 1, HIDDEN), jnp.float32),
        "w2": s * jax.random.normal(ks[3], (NUM_LAYERS, HIDDEN, HIDDEN), jnp.float32),
        "b2": jnp.zeros((NUM_LAYERS, 1, HIDDEN), jnp.float32),
        "wr": s * jax.random.normal(ks[4], (HIDDEN, EMB), jnp.float32),
        "br": jnp.zeros((1, EMB), jnp.float32),
        "wo": s * jax.random.normal(ks[5], (EMB, 1), jnp.float32),
        "bo": jnp.zeros((1, 1), jnp.float32),
    }


def _prepare_inputs(params, atom_feature, edge_index, bond_feature, batch, num_graphs):
    """Shared padding / dtype prep for the kernel and the pure-JAX reference."""
    n = atom_feature.shape[0]
    e = bond_feature.shape[0]
    bf16 = jnp.bfloat16
    f32 = jnp.float32

    x_pad = jnp.zeros((n, NODE_FEAT_PAD), f32).at[:, :NODE_FEAT].set(atom_feature)
    wn_pad = jnp.zeros((NODE_FEAT_PAD, HIDDEN), f32).at[:NODE_FEAT, :].set(params["wn"])
    wr_pad = jnp.zeros((HIDDEN, EMB_PAD), f32).at[:, :EMB].set(params["wr"])
    br_pad = jnp.zeros((1, EMB_PAD), f32).at[:, :EMB].set(params["br"])
    wo_pad = jnp.zeros((1, EMB_PAD), f32).at[:, :EMB].set(params["wo"][:, 0][None, :])

    # Hoist the degenerate K=5 edge projection out of the kernel (lane-dense [E,128]).
    eh = bond_feature @ params["we"] + params["be"]

    return {
        "x": x_pad.astype(bf16),
        "eh": eh.astype(f32),
        "src": edge_index[0].astype(jnp.int32).reshape(e, 1),
        "dst": edge_index[1].astype(jnp.int32).reshape(1, e),
        "batch": batch.astype(jnp.int32).reshape(1, n),
        "wn": wn_pad.astype(bf16),
        "bn": params["bn"],
        "w1": params["w1"].astype(bf16),
        "b1": params["b1"],
        "w2": params["w2"].astype(bf16),
        "b2": params["b2"],
        "wr": wr_pad.astype(bf16),
        "br": br_pad,
        "wo": wo_pad,
        "bo": params["bo"],
    }


def scoring_forward(params, atom_feature, edge_index, bond_feature, batch, num_graphs):
    """Equivalent of scoring_model.forward on an already-materialized batch."""
    prep = _prepare_inputs(params, atom_feature, edge_index, bond_feature, batch, num_graphs)
    args = (prep["x"], prep["eh"], prep["src"], prep["dst"], prep["batch"],
            prep["wn"], prep["bn"], prep["w1"], prep["b1"], prep["w2"], prep["b2"],
            prep["wr"], prep["br"], prep["wo"], prep["bo"])

    n = atom_feature.shape[0]
    e = bond_feature.shape[0]
    g = num_graphs
    flops = 2 * (n * NODE_FEAT_PAD * HIDDEN
                 + NUM_LAYERS * (e * n * HIDDEN          # gather matmul
                                 + n * e * HIDDEN        # scatter-add matmul
                                 + 2 * n * HIDDEN * HIDDEN)  # layer MLP
                 + g * n * HIDDEN + g * HIDDEN * EMB_PAD)
    bytes_accessed = sum(int(a.size) * a.dtype.itemsize for a in args) + g * 4

    out = pl.pallas_call(
        _gine_scoring_kernel,
        out_shape=jax.ShapeDtypeStruct((g, 1), jnp.float32),
        in_specs=[pl.BlockSpec(memory_space=pltpu.MemorySpace.VMEM) for _ in args],
        out_specs=pl.BlockSpec(memory_space=pltpu.MemorySpace.VMEM),
        compiler_params=pltpu.CompilerParams(vmem_limit_bytes=32 * 1024 * 1024),
        cost_estimate=pl.CostEstimate(flops=flops, transcendentals=0,
                                      bytes_accessed=bytes_accessed),
    )(*args)
    return out[:, 0]   # .squeeze()


def reference_forward(params, atom_feature, edge_index, bond_feature, batch, num_graphs):
    """Pure-JAX reference mirroring the kernel math (bf16 matmul operands, f32 accum)."""
    prep = _prepare_inputs(params, atom_feature, edge_index, bond_feature, batch, num_graphs)
    bf16 = jnp.bfloat16
    f32 = jnp.float32
    n = atom_feature.shape[0]

    src_oh = jax.nn.one_hot(edge_index[0], n, dtype=f32).astype(bf16)        # [E, N]
    dst_sc = jax.nn.one_hot(edge_index[1], n, dtype=f32).astype(bf16).T      # [N, E]
    pool = jax.nn.one_hot(batch, num_graphs, dtype=f32).astype(bf16).T       # [G, N]

    h = jnp.maximum(jnp.dot(prep["x"], prep["wn"], preferred_element_type=f32) + prep["bn"], 0.0)
    eh = prep["eh"]
    for l in range(NUM_LAYERS):
        msg = jnp.maximum(jnp.dot(src_oh, h.astype(bf16), preferred_element_type=f32) + eh, 0.0)
        agg = jnp.dot(dst_sc, msg.astype(bf16), preferred_element_type=f32)
        z = h + agg
        z = jnp.maximum(jnp.dot(z.astype(bf16), prep["w1"][l], preferred_element_type=f32)
                        + prep["b1"][l], 0.0)
        z = jnp.dot(z.astype(bf16), prep["w2"][l], preferred_element_type=f32) + prep["b2"][l]
        h = jnp.maximum(z, 0.0)
    gsum = jnp.dot(pool, h.astype(bf16), preferred_element_type=f32)
    emb = jnp.dot(gsum.astype(bf16), prep["wr"], preferred_element_type=f32) + prep["br"]
    out = jnp.sum(emb * prep["wo"], axis=-1) + prep["bo"][0, 0]
    return out


if __name__ == "__main__":
    key = jax.random.PRNGKey(0)
    k_param, k_x, k_e, k_edge = jax.random.split(key, 4)

    # Synthetic batch of 2 graphs, 16 nodes each (replaces torch.load of PDBBind graphs).
    # TODO(synk): real pipeline loads PyG .pt graphs from disk; synthetic graph used here.
    N, E, G = 32, 64, 2
    atom_feature = jax.random.uniform(k_x, (N, NODE_FEAT), jnp.float32)
    bond_feature = jax.random.uniform(k_e, (E, EDGE_FEAT), jnp.float32)
    batch = jnp.concatenate([jnp.zeros(16, jnp.int32), jnp.ones(16, jnp.int32)])
    # edges stay within each graph of 16 nodes
    e_src = jax.random.randint(jax.random.fold_in(k_edge, 0), (E,), 0, 16)
    e_dst = jax.random.randint(jax.random.fold_in(k_edge, 1), (E,), 0, 16)
    graph_off = jnp.where(jnp.arange(E) < E // 2, 0, 16).astype(jnp.int32)
    edge_index = jnp.stack([e_src + graph_off, e_dst + graph_off]).astype(jnp.int32)

    params = init_params(k_param)

    out = scoring_forward(params, atom_feature, edge_index, bond_feature, batch, G)
    out = jax.block_until_ready(out)

    ref = reference_forward(params, atom_feature, edge_index, bond_feature, batch, G)
    ref = jax.block_until_ready(ref)

    assert out.shape == (G,)
    assert jnp.allclose(out, ref, rtol=1e-2, atol=1e-2), (out, ref)

    print("KERNEL_OK")
</pallas_src>

<mosaic_0001>
module attributes {stable_mosaic.version = 11 : i64} {
  func.func @_gine_scoring_kernel(%arg0: memref<32x256xbf16, #tpu.memory_space<vmem>>, %arg1: memref<64x128xf32, #tpu.memory_space<vmem>>, %arg2: memref<64x1xi32, #tpu.memory_space<vmem>>, %arg3: memref<1x64xi32, #tpu.memory_space<vmem>>, %arg4: memref<1x32xi32, #tpu.memory_space<vmem>>, %arg5: memref<256x128xbf16, #tpu.memory_space<vmem>>, %arg6: memref<1x128xf32, #tpu.memory_space<vmem>>, %arg7: memref<3x128x128xbf16, #tpu.memory_space<vmem>>, %arg8: memref<3x1x128xf32, #tpu.memory_space<vmem>>, %arg9: memref<3x128x128xbf16, #tpu.memory_space<vmem>>, %arg10: memref<3x1x128xf32, #tpu.memory_space<vmem>>, %arg11: memref<128x128xbf16, #tpu.memory_space<vmem>>, %arg12: memref<1x128xf32, #tpu.memory_space<vmem>>, %arg13: memref<1x128xf32, #tpu.memory_space<vmem>>, %arg14: memref<1x1xf32, #tpu.memory_space<vmem>>, %arg15: memref<2x1xf32, #tpu.memory_space<vmem>>) attributes {dimension_semantics = [], scalar_prefetch = 0 : i64, scratch_operands = 0 : i64, tpu.core_type = #tpu.core_type<tc>} {
    %0 = tpu.iota {dimensions = array<i32: 1>} : vector<64x32xi32>
    %c0 = arith.constant 0 : index
    %c0_0 = arith.constant 0 : index
    %1 = vector.load %arg2[%c0, %c0_0] : memref<64x1xi32, #tpu.memory_space<vmem>>, vector<64x1xi32>
    %2 = vector.broadcast %1 : vector<64x1xi32> to vector<64x32xi32>
    %3 = arith.cmpi eq, %0, %2 : vector<64x32xi32>
    %cst = arith.constant 1.000000e+00 : f32
    %cst_1 = arith.constant 0.000000e+00 : f32
    %4 = vector.broadcast %cst : f32 to vector<64x32xf32>
    %5 = vector.broadcast %cst_1 : f32 to vector<64x32xf32>
    %6 = arith.select %3, %4, %5 : vector<64x32xi1>, vector<64x32xf32>
    %7 = arith.truncf %6 : vector<64x32xf32> to vector<64x32xbf16>
    %8 = tpu.iota {dimensions = array<i32: 0>} : vector<32x64xi32>
    %c0_2 = arith.constant 0 : index
    %c0_3 = arith.constant 0 : index
    %9 = vector.load %arg3[%c0_2, %c0_3] : memref<1x64xi32, #tpu.memory_space<vmem>>, vector<1x64xi32>
    %10 = vector.broadcast %9 : vector<1x64xi32> to vector<32x64xi32>
    %11 = arith.cmpi eq, %8, %10 : vector<32x64xi32>
    %cst_4 = arith.constant 1.000000e+00 : f32
    %cst_5 = arith.constant 0.000000e+00 : f32
    %12 = vector.broadcast %cst_4 : f32 to vector<32x64xf32>
    %13 = vector.broadcast %cst_5 : f32 to vector<32x64xf32>
    %14 = arith.select %11, %12, %13 : vector<32x64xi1>, vector<32x64xf32>
    %15 = arith.truncf %14 : vector<32x64xf32> to vector<32x64xbf16>
    %16 = tpu.iota {dimensions = array<i32: 0>} : vector<2x32xi32>
    %c0_6 = arith.constant 0 : index
    %c0_7 = arith.constant 0 : index
    %17 = vector.load %arg4[%c0_6, %c0_7] : memref<1x32xi32, #tpu.memory_space<vmem>>, vector<1x32xi32>
    %18 = vector.broadcast %17 : vector<1x32xi32> to vector<2x32xi32>
    %19 = arith.cmpi eq, %16, %18 : vector<2x32xi32>
    %cst_8 = arith.constant 1.000000e+00 : f32
    %cst_9 = arith.constant 0.000000e+00 : f32
    %20 = vector.broadcast %cst_8 : f32 to vector<2x32xf32>
    %21 = vector.broadcast %cst_9 : f32 to vector<2x32xf32>
    %22 = arith.select %19, %20, %21 : vector<2x32xi1>, vector<2x32xf32>
    %23 = arith.truncf %22 : vector<2x32xf32> to vector<2x32xbf16>
    %c0_10 = arith.constant 0 : index
    %c0_11 = arith.constant 0 : index
    %24 = vector.load %arg0[%c0_10, %c0_11] : memref<32x256xbf16, #tpu.memory_space<vmem>>, vector<32x256xbf16>
    %c0_12 = arith.constant 0 : index
    %c0_13 = arith.constant 0 : index
    %25 = vector.load %arg5[%c0_12, %c0_13] : memref<256x128xbf16, #tpu.memory_space<vmem>>, vector<256x128xbf16>
    %cst_14 = arith.constant dense<0.000000e+00> : vector<32x128xf32>
    %26 = tpu.matmul %24, %25, %cst_14 {dimension_numbers = #tpu.dot_dimension_numbers<[1], [0], [0], [1], [0, 0, 1, 1], [], []>} : vector<32x256xbf16>, vector<256x128xbf16>, vector<32x128xf32> -> vector<32x128xf32>
    %c0_15 = arith.constant 0 : index
    %c0_16 = arith.constant 0 : index
    %27 = vector.load %arg6[%c0_15, %c0_16] : memref<1x128xf32, #tpu.memory_space<vmem>>, vector<1x128xf32>
    %28 = vector.broadcast %27 : vector<1x128xf32> to vector<32x128xf32>
    %29 = arith.addf %26, %28 : vector<32x128xf32>
    %cst_17 = arith.constant 0.000000e+00 : f32
    %30 = vector.broadcast %cst_17 : f32 to vector<32x128xf32>
    %31 = arith.maximumf %29, %30 : vector<32x128xf32>
    %c0_18 = arith.constant 0 : index
    %c0_19 = arith.constant 0 : index
    %32 = vector.load %arg1[%c0_18, %c0_19] : memref<64x128xf32, #tpu.memory_space<vmem>>, vector<64x128xf32>
    %33 = arith.truncf %31 : vector<32x128xf32> to vector<32x128xbf16>
    %cst_20 = arith.constant dense<0.000000e+00> : vector<64x128xf32>
    %34 = tpu.matmul %7, %33, %cst_20 {dimension_numbers = #tpu.dot_dimension_numbers<[1], [0], [0], [1], [0, 0, 1, 1], [], []>} : vector<64x32xbf16>, vector<32x128xbf16>, vector<64x128xf32> -> vector<64x128xf32>
    %35 = arith.addf %34, %32 : vector<64x128xf32>
    %cst_21 = arith.constant 0.000000e+00 : f32
    %36 = vector.broadcast %cst_21 : f32 to vector<64x128xf32>
    %37 = arith.maximumf %35, %36 : vector<64x128xf32>
    %38 = arith.truncf %37 : vector<64x128xf32> to vector<64x128xbf16>
    %cst_22 = arith.constant dense<0.000000e+00> : vector<32x128xf32>
    %39 = tpu.matmul %15, %38, %cst_22 {dimension_numbers = #tpu.dot_dimension_numbers<[1], [0], [0], [1], [0, 0, 1, 1], [], []>} : vector<32x64xbf16>, vector<64x128xbf16>, vector<32x128xf32> -> vector<32x128xf32>
    %40 = arith.addf %31, %39 : vector<32x128xf32>
    %41 = arith.truncf %40 : vector<32x128xf32> to vector<32x128xbf16>
    %c0_23 = arith.constant 0 : index
    %c0_24 = arith.constant 0 : index
    %c0_25 = arith.constant 0 : index
    %42 = vector.load %arg7[%c0_23, %c0_24, %c0_25] : memref<3x128x128xbf16, #tpu.memory_space<vmem>>, vector<1x128x128xbf16>
    %43 = vector.shape_cast %42 : vector<1x128x128xbf16> to vector<128x128xbf16>
    %cst_26 = arith.constant dense<0.000000e+00> : vector<32x128xf32>
    %44 = tpu.matmul %41, %43, %cst_26 {dimension_numbers = #tpu.dot_dimension_numbers<[1], [0], [0], [1], [0, 0, 1, 1], [], []>} : vector<32x128xbf16>, vector<128x128xbf16>, vector<32x128xf32> -> vector<32x128xf32>
    %c0_27 = arith.constant 0 : index
    %c0_28 = arith.constant 0 : index
    %c0_29 = arith.constant 0 : index
    %45 = vector.load %arg8[%c0_27, %c0_28, %c0_29] : memref<3x1x128xf32, #tpu.memory_space<vmem>>, vector<1x1x128xf32>
    %46 = vector.shape_cast %45 : vector<1x1x128xf32> to vector<1x128xf32>
    %47 = vector.broadcast %46 : vector<1x128xf32> to vector<32x128xf32>
    %48 = arith.addf %44, %47 : vector<32x128xf32>
    %cst_30 = arith.constant 0.000000e+00 : f32
    %49 = vector.broadcast %cst_30 : f32 to vector<32x128xf32>
    %50 = arith.maximumf %48, %49 : vector<32x128xf32>
    %51 = arith.truncf %50 : vector<32x128xf32> to vector<32x128xbf16>
    %c0_31 = arith.constant 0 : index
    %c0_32 = arith.constant 0 : index
    %c0_33 = arith.constant 0 : index
    %52 = vector.load %arg9[%c0_31, %c0_32, %c0_33] : memref<3x128x128xbf16, #tpu.memory_space<vmem>>, vector<1x128x128xbf16>
    %53 = vector.shape_cast %52 : vector<1x128x128xbf16> to vector<128x128xbf16>
    %cst_34 = arith.constant dense<0.000000e+00> : vector<32x128xf32>
    %54 = tpu.matmul %51, %53, %cst_34 {dimension_numbers = #tpu.dot_dimension_numbers<[1], [0], [0], [1], [0, 0, 1, 1], [], []>} : vector<32x128xbf16>, vector<128x128xbf16>, vector<32x128xf32> -> vector<32x128xf32>
    %c0_35 = arith.constant 0 : index
    %c0_36 = arith.constant 0 : index
    %c0_37 = arith.constant 0 : index
    %55 = vector.load %arg10[%c0_35, %c0_36, %c0_37] : memref<3x1x128xf32, #tpu.memory_space<vmem>>, vector<1x1x128xf32>
    %56 = vector.shape_cast %55 : vector<1x1x128xf32> to vector<1x128xf32>
    %57 = vector.broadcast %56 : vector<1x128xf32> to vector<32x128xf32>
    %58 = arith.addf %54, %57 : vector<32x128xf32>
    %cst_38 = arith.constant 0.000000e+00 : f32
    %59 = vector.broadcast %cst_38 : f32 to vector<32x128xf32>
    %60 = arith.maximumf %58, %59 : vector<32x128xf32>
    %61 = arith.truncf %60 : vector<32x128xf32> to vector<32x128xbf16>
    %cst_39 = arith.constant dense<0.000000e+00> : vector<64x128xf32>
    %62 = tpu.matmul %7, %61, %cst_39 {dimension_numbers = #tpu.dot_dimension_numbers<[1], [0], [0], [1], [0, 0, 1, 1], [], []>} : vector<64x32xbf16>, vector<32x128xbf16>, vector<64x128xf32> -> vector<64x128xf32>
    %63 = arith.addf %62, %32 : vector<64x128xf32>
    %cst_40 = arith.constant 0.000000e+00 : f32
    %64 = vector.broadcast %cst_40 : f32 to vector<64x128xf32>
    %65 = arith.maximumf %63, %64 : vector<64x128xf32>
    %66 = arith.truncf %65 : vector<64x128xf32> to vector<64x128xbf16>
    %cst_41 = arith.constant dense<0.000000e+00> : vector<32x128xf32>
    %67 = tpu.matmul %15, %66, %cst_41 {dimension_numbers = #tpu.dot_dimension_numbers<[1], [0], [0], [1], [0, 0, 1, 1], [], []>} : vector<32x64xbf16>, vector<64x128xbf16>, vector<32x128xf32> -> vector<32x128xf32>
    %68 = arith.addf %60, %67 : vector<32x128xf32>
    %69 = arith.truncf %68 : vector<32x128xf32> to vector<32x128xbf16>
    %c1 = arith.constant 1 : index
    %c0_42 = arith.constant 0 : index
    %c0_43 = arith.constant 0 : index
    %70 = vector.load %arg7[%c1, %c0_42, %c0_43] : memref<3x128x128xbf16, #tpu.memory_space<vmem>>, vector<1x128x128xbf16>
    %71 = vector.shape_cast %70 : vector<1x128x128xbf16> to vector<128x128xbf16>
    %cst_44 = arith.constant dense<0.000000e+00> : vector<32x128xf32>
    %72 = tpu.matmul %69, %71, %cst_44 {dimension_numbers = #tpu.dot_dimension_numbers<[1], [0], [0], [1], [0, 0, 1, 1], [], []>} : vector<32x128xbf16>, vector<128x128xbf16>, vector<32x128xf32> -> vector<32x128xf32>
    %c1_45 = arith.constant 1 : index
    %c0_46 = arith.constant 0 : index
    %c0_47 = arith.constant 0 : index
    %73 = vector.load %arg8[%c1_45, %c0_46, %c0_47] : memref<3x1x128xf32, #tpu.memory_space<vmem>>, vector<1x1x128xf32>
    %74 = vector.shape_cast %73 : vector<1x1x128xf32> to vector<1x128xf32>
    %75 = vector.broadcast %74 : vector<1x128xf32> to vector<32x128xf32>
    %76 = arith.addf %72, %75 : vector<32x128xf32>
    %cst_48 = arith.constant 0.000000e+00 : f32
    %77 = vector.broadcast %cst_48 : f32 to vector<32x128xf32>
    %78 = arith.maximumf %76, %77 : vector<32x128xf32>
    %79 = arith.truncf %78 : vector<32x128xf32> to vector<32x128xbf16>
    %c1_49 = arith.constant 1 : index
    %c0_50 = arith.constant 0 : index
    %c0_51 = arith.constant 0 : index
    %80 = vector.load %arg9[%c1_49, %c0_50, %c0_51] : memref<3x128x128xbf16, #tpu.memory_space<vmem>>, vector<1x128x128xbf16>
    %81 = vector.shape_cast %80 : vector<1x128x128xbf16> to vector<128x128xbf16>
    %cst_52 = arith.constant dense<0.000000e+00> : vector<32x128xf32>
    %82 = tpu.matmul %79, %81, %cst_52 {dimension_numbers = #tpu.dot_dimension_numbers<[1], [0], [0], [1], [0, 0, 1, 1], [], []>} : vector<32x128xbf16>, vector<128x128xbf16>, vector<32x128xf32> -> vector<32x128xf32>
    %c1_53 = arith.constant 1 : index
    %c0_54 = arith.constant 0 : index
    %c0_55 = arith.constant 0 : index
    %83 = vector.load %arg10[%c1_53, %c0_54, %c0_55] : memref<3x1x128xf32, #tpu.memory_space<vmem>>, vector<1x1x128xf32>
    %84 = vector.shape_cast %83 : vector<1x1x128xf32> to vector<1x128xf32>
    %85 = vector.broadcast %84 : vector<1x128xf32> to vector<32x128xf32>
    %86 = arith.addf %82, %85 : vector<32x128xf32>
    %cst_56 = arith.constant 0.000000e+00 : f32
    %87 = vector.broadcast %cst_56 : f32 to vector<32x128xf32>
    %88 = arith.maximumf %86, %87 : vector<32x128xf32>
    %89 = arith.truncf %88 : vector<32x128xf32> to vector<32x128xbf16>
    %cst_57 = arith.constant dense<0.000000e+00> : vector<64x128xf32>
    %90 = tpu.matmul %7, %89, %cst_57 {dimension_numbers = #tpu.dot_dimension_numbers<[1], [0], [0], [1], [0, 0, 1, 1], [], []>} : vector<64x32xbf16>, vector<32x128xbf16>, vector<64x128xf32> -> vector<64x128xf32>
    %91 = arith.addf %90, %32 : vector<64x128xf32>
    %cst_58 = arith.constant 0.000000e+00 : f32
    %92 = vector.broadcast %cst_58 : f32 to vector<64x128xf32>
    %93 = arith.maximumf %91, %92 : vector<64x128xf32>
    %94 = arith.truncf %93 : vector<64x128xf32> to vector<64x128xbf16>
    %cst_59 = arith.constant dense<0.000000e+00> : vector<32x128xf32>
    %95 = tpu.matmul %15, %94, %cst_59 {dimension_numbers = #tpu.dot_dimension_numbers<[1], [0], [0], [1], [0, 0, 1, 1], [], []>} : vector<32x64xbf16>, vector<64x128xbf16>, vector<32x128xf32> -> vector<32x128xf32>
    %96 = arith.addf %88, %95 : vector<32x128xf32>
    %97 = arith.truncf %96 : vector<32x128xf32> to vector<32x128xbf16>
    %c2 = arith.constant 2 : index
    %c0_60 = arith.constant 0 : index
    %c0_61 = arith.constant 0 : index
    %98 = vector.load %arg7[%c2, %c0_60, %c0_61] : memref<3x128x128xbf16, #tpu.memory_space<vmem>>, vector<1x128x128xbf16>
    %99 = vector.shape_cast %98 : vector<1x128x128xbf16> to vector<128x128xbf16>
    %cst_62 = arith.constant dense<0.000000e+00> : vector<32x128xf32>
    %100 = tpu.matmul %97, %99, %cst_62 {dimension_numbers = #tpu.dot_dimension_numbers<[1], [0], [0], [1], [0, 0, 1, 1], [], []>} : vector<32x128xbf16>, vector<128x128xbf16>, vector<32x128xf32> -> vector<32x128xf32>
    %c2_63 = arith.constant 2 : index
    %c0_64 = arith.constant 0 : index
    %c0_65 = arith.constant 0 : index
    %101 = vector.load %arg8[%c2_63, %c0_64, %c0_65] : memref<3x1x128xf32, #tpu.memory_space<vmem>>, vector<1x1x128xf32>
    %102 = vector.shape_cast %101 : vector<1x1x128xf32> to vector<1x128xf32>
    %103 = vector.broadcast %102 : vector<1x128xf32> to vector<32x128xf32>
    %104 = arith.addf %100, %103 : vector<32x128xf32>
    %cst_66 = arith.constant 0.000000e+00 : f32
    %105 = vector.broadcast %cst_66 : f32 to vector<32x128xf32>
    %106 = arith.maximumf %104, %105 : vector<32x128xf32>
    %107 = arith.truncf %106 : vector<32x128xf32> to vector<32x128xbf16>
    %c2_67 = arith.constant 2 : index
    %c0_68 = arith.constant 0 : index
    %c0_69 = arith.constant 0 : index
    %108 = vector.load %arg9[%c2_67, %c0_68, %c0_69] : memref<3x128x128xbf16, #tpu.memory_space<vmem>>, vector<1x128x128xbf16>
    %109 = vector.shape_cast %108 : vector<1x128x128xbf16> to vector<128x128xbf16>
    %cst_70 = arith.constant dense<0.000000e+00> : vector<32x128xf32>
    %110 = tpu.matmul %107, %109, %cst_70 {dimension_numbers = #tpu.dot_dimension_numbers<[1], [0], [0], [1], [0, 0, 1, 1], [], []>} : vector<32x128xbf16>, vector<128x128xbf16>, vector<32x128xf32> -> vector<32x128xf32>
    %c2_71 = arith.constant 2 : index
    %c0_72 = arith.constant 0 : index
    %c0_73 = arith.constant 0 : index
    %111 = vector.load %arg10[%c2_71, %c0_72, %c0_73] : memref<3x1x128xf32, #tpu.memory_space<vmem>>, vector<1x1x128xf32>
    %112 = vector.shape_cast %111 : vector<1x1x128xf32> to vector<1x128xf32>
    %113 = vector.broadcast %112 : vector<1x128xf32> to vector<32x128xf32>
    %114 = arith.addf %110, %113 : vector<32x128xf32>
    %cst_74 = arith.constant 0.000000e+00 : f32
    %115 = vector.broadcast %cst_74 : f32 to vector<32x128xf32>
    %116 = arith.maximumf %114, %115 : vector<32x128xf32>
    %117 = arith.truncf %116 : vector<32x128xf32> to vector<32x128xbf16>
    %cst_75 = arith.constant dense<0.000000e+00> : vector<2x128xf32>
    %118 = tpu.matmul %23, %117, %cst_75 {dimension_numbers = #tpu.dot_dimension_numbers<[1], [0], [0], [1], [0, 0, 1, 1], [], []>} : vector<2x32xbf16>, vector<32x128xbf16>, vector<2x128xf32> -> vector<2x128xf32>
    %119 = arith.truncf %118 : vector<2x128xf32> to vector<2x128xbf16>
    %c0_76 = arith.constant 0 : index
    %c0_77 = arith.constant 0 : index
    %120 = vector.load %arg11[%c0_76, %c0_77] : memref<128x128xbf16, #tpu.memory_space<vmem>>, vector<128x128xbf16>
    %cst_78 = arith.constant dense<0.000000e+00> : vector<2x128xf32>
    %121 = tpu.matmul %119, %120, %cst_78 {dimension_numbers = #tpu.dot_dimension_numbers<[1], [0], [0], [1], [0, 0, 1, 1], [], []>} : vector<2x128xbf16>, vector<128x128xbf16>, vector<2x128xf32> -> vector<2x128xf32>
    %c0_79 = arith.constant 0 : index
    %c0_80 = arith.constant 0 : index
    %122 = vector.load %arg12[%c0_79, %c0_80] : memref<1x128xf32, #tpu.memory_space<vmem>>, vector<1x128xf32>
    %123 = vector.broadcast %122 : vector<1x128xf32> to vector<2x128xf32>
    %124 = arith.addf %121, %123 : vector<2x128xf32>
    %c0_81 = arith.constant 0 : index
    %c0_82 = arith.constant 0 : index
    %125 = vector.load %arg13[%c0_81, %c0_82] : memref<1x128xf32, #tpu.memory_space<vmem>>, vector<1x128xf32>
    %126 = vector.broadcast %125 : vector<1x128xf32> to vector<2x128xf32>
    %127 = arith.mulf %124, %126 : vector<2x128xf32>
    %cst_83 = arith.constant dense<0.000000e+00> : vector<2xf32>
    %128 = vector.multi_reduction <add>, %127, %cst_83 [1] : vector<2x128xf32> to vector<2xf32>
    %129 = vector.shape_cast %128 : vector<2xf32> to vector<2x1xf32>
    %c0_84 = arith.constant 0 : index
    %c0_85 = arith.constant 0 : index
    %130 = vector.load %arg14[%c0_84, %c0_85] : memref<1x1xf32, #tpu.memory_space<vmem>>, vector<1x1xf32>
    %131 = vector.broadcast %130 : vector<1x1xf32> to vector<2x1xf32>
    %132 = arith.addf %129, %131 : vector<2x1xf32>
    %c0_86 = arith.constant 0 : index
    %c0_87 = arith.constant 0 : index
    %133 = vector.load %arg15[%c0_86, %c0_87] : memref<2x1xf32, #tpu.memory_space<vmem>>, vector<2x1xf32>
    tpu.vector_store %arg15[%c0_86, %c0_87], %132 {strides = array<i32>} : memref<2x1xf32, #tpu.memory_space<vmem>>, vector<2x1xf32>,
    return
  }
}

</mosaic_0001>

<bundles_post_ra>
// kernel: tpu_custom_call.1
= control target key start
LH: loop header
LB: loop body
LE: loop exit
PB: predicated region body
PF: predicated region fallthrough
CT: control target
= control target key end

     0   :  { %s2869_s0 = inlined_call_operand.hbm [shape: bf16[32,256], index: 0, kind: input, shape index: {}]   ;;  %s2870_s1 = inlined_call_operand.vmem [shape: f32[64,128], index: 1, kind: input, shape index: {}]   ;;  %s2871_s2 = inlined_call_operand.vmem [shape: s32[64,1], index: 2, kind: input, shape index: {}]   ;;  %s2872_s3 = inlined_call_operand.vmem [shape: s32[1,64], index: 3, kind: input, shape index: {}]   ;;  %s2873_s4 = inlined_call_operand.vmem [shape: s32[1,32], index: 4, kind: input, shape index: {}]   ;;  %s2874_s5 = inlined_call_operand.hbm [shape: bf16[256,128], index: 5, kind: input, shape index: {}]   ;;  %s2875_s6 = inlined_call_operand.vmem [shape: f32[1,128], index: 6, kind: input, shape index: {}]   ;;  %s2876_s7 = inlined_call_operand.hbm [shape: bf16[3,128,128], index: 7, kind: input, shape index: {}]   ;;  %s2877_s8 = inlined_call_operand.vmem [shape: f32[3,1,128], index: 8, kind: input, shape index: {}]   ;;  %s2878_s9 = inlined_call_operand.hbm [shape: bf16[3,128,128], index: 9, kind: input, shape index: {}]   ;;  %s2879_s10 = inlined_call_operand.vmem [shape: f32[3,1,128], index: 10, kind: input, shape index: {}]   ;;  %s2880_s11 = inlined_call_operand.hbm [shape: bf16[128,128], index: 11, kind: input, shape index: {}]   ;;  %s2881_s12 = inlined_call_operand.vmem [shape: f32[1,128], index: 12, kind: input, shape index: {}]   ;;  %s2882_s13 = inlined_call_operand.vmem [shape: f32[1,128], index: 13, kind: input, shape index: {}]   ;;  %s2883_s14 = inlined_call_operand.<no memory space> [shape: f32[1,1], index: 14, kind: input, shape index: {}]   ;;  %s2884_s15 = inlined_call_operand.vmem [shape: f32[2,1], index: 15, kind: output, shape index: {}]  }
   0x1   :  { %v20_v0 = vstv %s2883_s14 }
   0x2   :  { %21 = vst [vmem:[#allocation2] sm:$0x1] %v20_v0 }
   0x3   :  { %22 = vsyncpa [#allocation4], 0 }
   0x4   :  { %23 = vsyncpa [#allocation6], 0 }
   0x5   :  { %24 = vsyncpa [#allocation9], 0  ;;  %s2454_s20 = smov [#allocation5]  }
   0x6   :  { %s50_s21 = sshll.u32 %s2454_s20, 4  ;;  %s51_s21 = int_to_ptr.vmem [resolvable:$true] %s50_s21 }
   0x7   :  { %s2356_s22 = scalar_lea.vmem %s51_s21, 2048  ;;  %p2361_p1 = scmp.lt.s32.totalorder %s51_s21, %s51_s21 }
   0x8   :  { %p2357_p0 = scmp.ne.s32.totalorder %s51_s21, %s2356_s22  ;;  %p2362_p2 = scmp.lt.s32.totalorder %s2356_s22, %s2356_s22 }
   0xa   :  { %p2363_p3 = por %p2362_p2, %p2361_p1 }
   0xc   :  { %p2364_p4 = pnand %p2363_p3, %p2357_p0 }
   0xe   :  { %2367 = shalt.err (!%p2364_p4)
}
   0xf   :  { %s2455_s23 = smov 64   ;;  %s2456_s24 = smov 4  }
  0x10   :  { %56 = dma.hbm_to_vmem [thread:$0]  %s2874_s5, 2048, %s51_s21, [#allocation6], %s2455_s23, %s2455_s23, %s2456_s24  }
  0x11   :  { %s2457_s26 = smov [#allocation8]   ;;  %s2458_s28 = smov [#allocation3]  }
  0x12   :  { %s78_s27 = sshll.u32 %s2457_s26, 4  ;;  %s30_s29 = sshll.u32 %s2458_s28, 4  ;;  %s79_s27 = int_to_ptr.vmem [resolvable:$true] %s78_s27  ;;  %s31_s29 = int_to_ptr.vmem [resolvable:$true] %s30_s29 }
  0x13   :  { %s2376_s30 = scalar_lea.vmem %s79_s27, 3072  ;;  %p2381_p6 = scmp.lt.s32.totalorder %s79_s27, %s79_s27 }
  0x14   :  { %p2377_p5 = scmp.ne.s32.totalorder %s79_s27, %s2376_s30  ;;  %p2382_p7 = scmp.lt.s32.totalorder %s2376_s30, %s2376_s30 }
  0x16   :  { %p2383_p8 = por %p2382_p7, %p2381_p6 }
  0x18   :  { %p2384_p9 = pnand %p2383_p8, %p2377_p5 }
  0x1a   :  { %2387 = shalt.err (!%p2384_p9)
}
  0x1b   :  { %84 = dma.hbm_to_vmem [thread:$0]  %s2878_s9, 3072, %s79_s27, [#allocation9], %s2455_s23, %s2455_s23, %s2456_s24  }
  0x1c   :  { %s2396_s5 = scalar_lea.vmem %s31_s29, 512  ;;  %p2401_p11 = scmp.lt.s32.totalorder %s31_s29, %s31_s29 }
  0x1d   :  { %p2397_p10 = scmp.ne.s32.totalorder %s31_s29, %s2396_s5  ;;  %p2402_p12 = scmp.lt.s32.totalorder %s2396_s5, %s2396_s5 }
  0x1f   :  { %p2403_p13 = por %p2402_p12, %p2401_p11 }
  0x21   :  { %p2404_p0 = pnand %p2403_p13, %p2397_p10 }
  0x23   :  { %2407 = shalt.err (!%p2404_p0)
}
  0x24   :  { %s2459_s18 = smov 128   ;;  %s2460_s19 = smov 8  }
  0x25   :  { %36 = dma.hbm_to_vmem [thread:$0]  %s2869_s0, 512, %s31_s29, [#allocation4], %s2459_s18, %s2459_s18, %s2460_s19  }
  0x26   :  { %s2461_s22 = smov [#allocation7]   ;;  %s2462_s25 = smov [#allocation10]  }
  0x27   :  { %s64_s14 = sshll.u32 %s2461_s22, 4  ;;  %s92_s26 = sshll.u32 %s2462_s25, 4  ;;  %s65_s14 = int_to_ptr.vmem [resolvable:$true] %s64_s14  ;;  %s93_s26 = int_to_ptr.vmem [resolvable:$true] %s92_s26 }
  0x28   :  { %s2416_s9 = scalar_lea.vmem %s65_s14, 3072  ;;  %p2421_p2 = scmp.lt.s32.totalorder %s65_s14, %s65_s14 }
  0x29   :  { %p2417_p1 = scmp.ne.s32.totalorder %s65_s14, %s2416_s9  ;;  %p2422_p3 = scmp.lt.s32.totalorder %s2416_s9, %s2416_s9 }
  0x2b   :  { %p2423_p4 = por %p2422_p3, %p2421_p2 }
  0x2d   :  { %p2424_p5 = pnand %p2423_p4, %p2417_p1 }
  0x2f   :  { %2427 = shalt.err (!%p2424_p5)
}
  0x30   :  { %70 = dma.hbm_to_vmem [thread:$0]  %s2876_s7, 3072, %s65_s14, [#allocation6], %s2455_s23, %s2455_s23, %s2456_s24  }
  0x31   :  { %s2436_s0 = scalar_lea.vmem %s93_s26, 1024  ;;  %p2441_p7 = scmp.lt.s32.totalorder %s93_s26, %s93_s26 }
  0x32   :  { %p2437_p6 = scmp.ne.s32.totalorder %s93_s26, %s2436_s0  ;;  %p2442_p8 = scmp.lt.s32.totalorder %s2436_s0, %s2436_s0 }
  0x34   :  { %p2443_p9 = por %p2442_p8, %p2441_p7 }
  0x36   :  { %p2444_p10 = pnand %p2443_p9, %p2437_p6 }
  0x38   :  { %2447 = shalt.err (!%p2444_p10)
}
  0x39   :  { %98 = dma.hbm_to_vmem [thread:$0]  %s2880_s11, 1024, %s93_s26, [#allocation9], %s2455_s23, %s2455_s23, %s2456_s24  }
  0x3a   :  { %2448 = dma.done.wait [#allocation4], 512  }
  0x3b   :  { %2449 = vsyncadd [#allocation4], 4294966784 }
  0x3c   :  { %2450 = dma.done.wait [#allocation6], 5120  }
  0x3d   :  { %2451 = vsyncadd [#allocation6], 4294962176 }
  0x3e   :  { %2452 = dma.done.wait [#allocation9], 4096  }
  0x3f   :  { %2453 = vsyncadd [#allocation9], 4294963200  ;;  %v2463_v1 = vmov 0   ;;  %v2270_v2 = vld [vmem:[#allocation5 + $0x78] sm:$0xff]   ;;  %v2272_v4 = vld [vmem:[#allocation5 + $0x70] sm:$0xff]   ;;  %v121_v30 = vlaneseq  ;;  %v2464_v33 = vmov 0.0  }
  0x40   :  { %2269 = vset.pattern.permute.xlu1 %v2463_v1  ;;  %2268 = vset.pattern.permute.xlu0 %v2463_v1  ;;  %v2271_v3 = vld [vmem:[#allocation5 + $0x38] sm:$0xff]   ;;  %v2273_v5 = vld [vmem:[#allocation5 + $0x30] sm:$0xff]   ;;  %v2274_v6 = vld [vmem:[#allocation5 + $0x68] sm:$0xff]   ;;  %vm425_vm2 = vcmask 261120   ;;  %vm515_vm11 = vcmask 523264   ;;  %vm2465_vm14 = vmmov 0  }
  0x41   :  { %1900 = vmatprep.subr.bf16.mxu0 %v2270_v2  ;;  %v2275_v7 = vld [vmem:[#allocation5 + $0x28] sm:$0xff]   ;;  %v2276_v8 = vld [vmem:[#allocation5 + $0x60] sm:$0xff]   ;;  %v2278_v10 = vld [vmem:[#allocation5 + $0x58] sm:$0xff]   ;;  %v122_v31 = vand.u32 127, %v121_v30 }
  0x42   :  { %1901 = vmatpush3.bf16.msra.mxu0 %v2271_v3  ;;  %v2277_v9 = vld [vmem:[#allocation5 + $0x20] sm:$0xff]   ;;  %v2279_v11 = vld [vmem:[#allocation5 + $0x18] sm:$0xff]   ;;  %v2280_v12 = vld [vmem:[#allocation5 + $0x50] sm:$0xff]  }
  0x43   :  { %1902 = vmatprep.subr.bf16.mxu0 %v2272_v4  ;;  %v2288_v13 = vld [vmem:[#allocation3 + $0x4] ss:$8 sps:$4 sm:$0xff]   ;;  %v2281_v15 = vld [vmem:[#allocation5 + $0x10] sm:$0xff]   ;;  %v2286_v26 = vld [vmem:[#allocation3] ss:$8 sps:$4 sm:$0xff]  }
  0x44   :  { %v125_v14 = vld [vmem:[%s2871_s2 + $0x10] sm:$0xff]  ;;  %394 = vmatprep.mubr.bf16.mxu0 %v2288_v13  ;;  %v123_v16 = vld [vmem:[%s2871_s2] sm:$0xff]  ;;  %v126_v18 = vld [vmem:[%s2871_s2 + $0x18] sm:$0xff] }
  0x45   :  { %v2282_v17 = vld [vmem:[#allocation5 + $0x48] sm:$0xff]   ;;  %138 = vperm.xlu1 %2269, %v125_v14   ;;  %132 = vperm.xlu0 %2268, %v123_v16   ;;  %v2284_v21 = vld [vmem:[#allocation5 + $0x40] sm:$0xff]   ;;  %v130_v25 = vld [vmem:[%s2871_s2 + $0x38] sm:$0xff] }
  0x46   :  { %1903 = vmatpush3.bf16.msra.mxu0 %v2273_v5  ;;  %v2283_v19 = vld [vmem:[#allocation5 + $0x8] sm:$0xff]   ;;  %v127_v23 = vld [vmem:[%s2871_s2 + $0x20] sm:$0xff]  ;;  %v2291_v29 = vld [vmem:[#allocation3 + $0x10] ss:$8 sps:$4 sm:$0xff]  }
  0x47   :  { %1904 = vmatprep.subr.bf16.mxu0 %v2274_v6  ;;  %v124_v20 = vld [vmem:[%s2871_s2 + $0x8] sm:$0xff]  ;;  %v129_v27 = vld [vmem:[%s2871_s2 + $0x30] sm:$0xff]  ;;  %v1791_v49 = vld [vmem:[%s2875_s6] ss:$0 sm:$0xff] }
  0x48   :  { %v128_v22 = vld [vmem:[%s2871_s2 + $0x28] sm:$0xff]  ;;  %v2289_v28 = vld [vmem:[#allocation3 + $0x14] ss:$8 sps:$4 sm:$0xff]  }
  0x49   :  { %141 = vperm.xlu1 %2269, %v126_v18   ;;  %v2285_v24 = vld [vmem:[#allocation5] sm:$0xff]   ;;  %135 = vperm.xlu0 %2268, %v124_v20   ;;  %v1789_v14 = vld [vmem:[%s2872_s3] ss:$0 sm:$0xff] }
  0x4a   :  { %1905 = vmatpush3.bf16.msra.mxu0 %v2275_v7 }
  0x4b   :  { %1906 = vmatprep.subr.bf16.mxu0 %v2276_v8 }
  0x4d   :  { %147 = vperm.xlu1 %2269, %v128_v22   ;;  %144 = vperm.xlu0 %2268, %v127_v23   ;;  %v2665_v22 = vld [vmem:[%s2870_s1 + $0x30] sm:$0xff] }
  0x4e   :  { %1907 = vmatpush3.bf16.msra.mxu0 %v2277_v9 }
  0x4f   :  { %1908 = vmatprep.subr.bf16.mxu0 %v2278_v10 }
  0x51   :  { %153 = vperm.xlu1 %2269, %v130_v25   ;;  %150 = vperm.xlu0 %2268, %v129_v27   ;;  %v2670_v25 = vld [vmem:[%s2870_s1 + $0x20] sm:$0xff] }
  0x52   :  { %1909 = vmatpush3.bf16.msra.mxu0 %v2279_v11 }
  0x53   :  { %1910 = vmatprep.subr.bf16.mxu0 %v2280_v12  ;;  %v2649_v12 = vshrl.u32 %v121_v30, 7  ;;  %v2686_v30 = vld [vmem:[%s2870_s1 + $0x28] sm:$0xff] }
  0x55   :  { %v177_v13 = vadd.s32 8, %v2649_v12  ;;  %vm185_vm9 = vcmp.eq.s32.totalorder %v2649_v12, %v1789_v14 }
  0x56   :  { %1911 = vmatpush3.bf16.msra.mxu0 %v2281_v15  ;;  %v189_v15 = vsel %vm185_vm9, 1.0, %v2464_v33 }
  0x57   :  { %1912 = vmatprep.subr.bf16.mxu0 %v2282_v17  ;;  %vm186_vm10 = vcmp.eq.s32.totalorder %v177_v13, %v1789_v14  ;;  %v2296_v13 = vld [vmem:[#allocation7 + $0x18] sm:$0xff]  }
  0x58   :  { %v190_v16 = vsel %vm186_vm10, 1.0, %v2464_v33 }
  0x59   :  { %v2658_v17 = vpack.c.bf16 %v190_v16, %v189_v15  ;;  %v2298_v15 = vld [vmem:[#allocation7 + $0x8] sm:$0xff]   ;;  %v2299_v16 = vld [vmem:[#allocation7] sm:$0xff]  }
  0x5a   :  { %1913 = vmatpush3.bf16.msra.mxu0 %v2283_v19 }
  0x5b   :  { %1914 = vmatprep.subr.bf16.mxu0 %v2284_v21 }
  0x5e   :  { %1915 = vmatpush3.bf16.msra.mxu0 %v2285_v24 }
  0x61   :  { %395 = vmatmul.mubr.bf16.vlgmr.msra.gmra.mxu0 %v2286_v26  ;;  %v2675_v26 = vld [vmem:[%s2870_s1 + $0x38] sm:$0xff] }
  0x62   :  { %402 = vmatprep.mubr.bf16.mxu0 %v2289_v28  ;;  %v2681_v28 = vld [vmem:[%s2870_s1 + $0x18] sm:$0xff] }
  0x69   :  { %403 = vmatmul.mubr.bf16.gmra.mxu0 %v2291_v29 }
  0xc0   :  { %v133_v32 = vpop.permute.xlu0 %132  ;;  %v139_v43 = vpop.permute.xlu1 %138 }
  0xc1   :  { %vm155_vm0 = vcmp.eq.s32.totalorder %v122_v31, %v133_v32  ;;  %vm157_vm3 = vcmp.eq.s32.totalorder %v122_v31, %v139_v43 }
  0xc2   :  { %v163_v34 = vsel %vm155_vm0, 1.0, %v2464_v33  ;;  %v165_v1 = vsel %vm157_vm3, 1.0, %v2464_v33  ;;  %vm1768_vm0 = vcmask 1041408  }
  0xc4   :  { %v136_v35 = vpop.permute.xlu0 %135  ;;  %v142_v54 = vpop.permute.xlu1 %141 }
  0xc5   :  { %vm156_vm1 = vcmp.eq.s32.totalorder %v122_v31, %v136_v35  ;;  %vm158_vm4 = vcmp.eq.s32.totalorder %v122_v31, %v142_v54  ;;  %v178_v54 = vadd.s32 16, %v2649_v12 }
  0xc6   :  { %v164_v36 = vsel %vm156_vm1, 1.0, %v2464_v33  ;;  %v166_v2 = vsel %vm158_vm4, 1.0, %v2464_v33  ;;  %vm1780_vm1 = vcmask 1024  }
  0xc7   :  { %v2603_v37 = vpack.c.bf16 %v164_v36, %v163_v34  ;;  %v2634_v7 = vpack.c.bf16 %v166_v2, %v165_v1  ;;  %v2693_v34 = vld [vmem:[%s2870_s1 + $0x10] sm:$0xff]  ;;  %vm187_vm12 = vcmp.eq.s32.totalorder %v178_v54, %v1789_v14 }
  0xc8   :  { %v148_v62 = vpop.permute.xlu1 %147  ;;  %v145_v63 = vpop.permute.xlu0 %144  ;;  %v191_v2 = vsel %vm187_vm12, 1.0, %v2464_v33 }
  0xc9   :  { %2040 = vmatprep.mubr.msk.bf16.mxu1 %vm425_vm2, %v2603_v37  ;;  %vm160_vm5 = vcmp.eq.s32.totalorder %v122_v31, %v148_v62  ;;  %vm159_vm6 = vcmp.eq.s32.totalorder %v122_v31, %v145_v63 }
  0xca   :  { %v168_v3 = vsel %vm160_vm5, 1.0, %v2464_v33  ;;  %v167_v4 = vsel %vm159_vm6, 1.0, %v2464_v33 }
  0xcb   :  { %v2636_v8 = vpack.c.bf16 %v168_v3, %v167_v4  ;;  %v2292_v4 = vld [vmem:[#allocation7 + $0x38] sm:$0xff]  }
  0xcc   :  { %v154_v5 = vpop.permute.xlu1 %153  ;;  %v151_v6 = vpop.permute.xlu0 %150 }
  0xcd   :  { %vm162_vm7 = vcmp.eq.s32.totalorder %v122_v31, %v154_v5  ;;  %vm161_vm8 = vcmp.eq.s32.totalorder %v122_v31, %v151_v6  ;;  %v2293_v6 = vld [vmem:[#allocation7 + $0x30] sm:$0xff]  }
  0xce   :  { %v170_v9 = vsel %vm162_vm7, 1.0, %v2464_v33  ;;  %v169_v10 = vsel %vm161_vm8, 1.0, %v2464_v33 }
  0xcf   :  { %v2644_v11 = vpack.c.bf16 %v170_v9, %v169_v10  ;;  %v2294_v9 = vld [vmem:[#allocation7 + $0x28] sm:$0xff]   ;;  %v2295_v10 = vld [vmem:[#allocation7 + $0x20] sm:$0xff]  }
 0x121   :  { %v1916_v38 = vpop.f32.mrf.mxu0 }
 0x123   :  { %v1917_v39 = vpop.f32.mrf.mxu0 }
 0x124   :  { %v1918_v48 = vadd.f32 %v1917_v39, %v1916_v38 }
 0x125   :  { %v1919_v40 = vpop.f32.mrf.mxu0 }
 0x126   :  { %v2614_v55 = vadd.f32 %v1918_v48, %v1791_v49 }
 0x127   :  { %v1920_v41 = vpop.f32.mrf.mxu0 }
 0x128   :  { %v1921_v45 = vadd.f32 %v1920_v41, %v1919_v40  ;;  %v411_v60 = vmax.f32 %v2614_v55, 0.0  ;;  %v2700_v41 = vld [vmem:[%s2870_s1 + $0x8] sm:$0xff] }
 0x129   :  { %v1922_v42 = vpop.f32.mrf.mxu0  ;;  %v2307_v55 = vld [vmem:[#allocation8] sm:$0xff]  }
 0x12a   :  { %v2610_v51 = vadd.f32 %v1921_v45, %v1791_v49 }
 0x12b   :  { %v1923_v44 = vpop.f32.mrf.mxu0 }
 0x12c   :  { %v1924_v46 = vadd.f32 %v1923_v44, %v1922_v42  ;;  %v412_v57 = vmax.f32 %v2610_v51, 0.0 }
 0x12d   :  { %v1925_v47 = vpop.f32.mrf.mxu0 }
 0x12e   :  { %v2612_v52 = vadd.f32 %v1924_v46, %v1791_v49  ;;  %v423_v0 = vpack.c.bf16 %v412_v57, %v411_v60  ;;  %v2706_v46 = vld [vmem:[%s2870_s1] sm:$0xff] }
 0x12f   :  { %v1926_v50 = vpop.f32.mrf.mxu0 }
 0x130   :  { %v1927_v53 = vadd.f32 %v1926_v50, %v1925_v47  ;;  %v413_v58 = vmax.f32 %v2612_v52, 0.0  ;;  %v1818_v52 = vld [vmem:[%s2877_s8] ss:$0 sm:$0xff] }
 0x132   :  { %v2616_v56 = vadd.f32 %v1927_v53, %v1791_v49 }
 0x134   :  { %v414_v59 = vmax.f32 %v2616_v56, 0.0  ;;  %v2306_v56 = vld [vmem:[#allocation8 + $0x8] sm:$0xff]  }
 0x136   :  { %v424_v61 = vpack.c.bf16 %v414_v59, %v413_v58 }
 0x138   :  { %2036 = vmatprep.subr.bf16.mxu1 %v424_v61 }
 0x139   :  { %2037 = vmatpush3.bf16.msra.mxu1 %v424_v61  ;;  %v179_v61 = vadd.s32 24, %v2649_v12 }
 0x13a   :  { %2038 = vmatprep.subr.bf16.mxu1 %v423_v0 }
 0x13b   :  { %vm188_vm13 = vcmp.eq.s32.totalorder %v179_v61, %v1789_v14  ;;  %v2297_v14 = vld [vmem:[#allocation7 + $0x10] sm:$0xff]  }
 0x13c   :  { %v192_v3 = vsel %vm188_vm13, 1.0, %v2464_v33 }
 0x13d   :  { %2039 = vmatpush3.bf16.msra.mxu1 %v423_v0  ;;  %v2714_v5 = vpack.c.bf16 %v192_v3, %v191_v2 }
 0x140   :  { %2041 = vmatmul.mubr.msk.bf16.vlgmr.msra.gmra.mxu1 %vm425_vm2, %v2634_v7 }
 0x141   :  { %2044 = vmatprep.mubr.msk.bf16.mxu1 %vm425_vm2, %v2636_v8 }
 0x148   :  { %2045 = vmatmul.mubr.msk.bf16.gmra.mxu1 %vm425_vm2, %v2644_v11 }
 0x149   :  { %2056 = vmatprep.mubr.msk.bf16.mxu1 %vm515_vm11, %v2658_v17 }
 0x200   :  { %v2042_v18 = vpop.f32.mrf.mxu1 }
 0x201   :  { %v481_v42 = vadd.f32 %v2042_v18, %v2693_v34  ;;  %v2300_v18 = vld [vmem:[#allocation8 + $0x38] sm:$0xff]  }
 0x202   :  { %v472_v19 = vpop.f32.mrf.mxu1  ;;  %2080 = vmatprep.subr.bf16.mxu0 %v2300_v18 }
 0x203   :  { %v505_v50 = vmax.f32 %v481_v42, 0.0  ;;  %v473_v53 = vadd.f32 %v472_v19, %v2706_v46  ;;  %v2301_v19 = vld [vmem:[#allocation8 + $0x30] sm:$0xff]   ;;  %2081 = vmatpush3.bf16.msra.mxu0 %v2300_v18 }
 0x204   :  { %v2043_v20 = vpop.f32.mrf.mxu1  ;;  %2082 = vmatprep.subr.bf16.mxu0 %v2301_v19  ;;  %v2305_v42 = vld [vmem:[#allocation8 + $0x10] sm:$0xff]  }
 0x205   :  { %v484_v36 = vadd.f32 %v2043_v20, %v2681_v28  ;;  %v503_v0 = vmax.f32 %v473_v53, 0.0  ;;  %v2302_v20 = vld [vmem:[#allocation8 + $0x28] sm:$0xff]  }
 0x206   :  { %v475_v21 = vpop.f32.mrf.mxu1 }
 0x207   :  { %v506_v47 = vmax.f32 %v484_v36, 0.0  ;;  %v476_v48 = vadd.f32 %v475_v21, %v2700_v41  ;;  %2083 = vmatpush3.bf16.msra.mxu0 %v2301_v19  ;;  %v2303_v21 = vld [vmem:[#allocation8 + $0x20] sm:$0xff]  }
 0x208   :  { %v2046_v23 = vpop.f32.mrf.mxu1  ;;  %2084 = vmatprep.subr.bf16.mxu0 %v2302_v20 }
 0x209   :  { %v497_v27 = vadd.f32 %v2046_v23, %v2665_v22  ;;  %v512_v62 = vpack.c.bf16 %v506_v47, %v505_v50  ;;  %v504_v63 = vmax.f32 %v476_v48, 0.0  ;;  %v2304_v23 = vld [vmem:[#allocation8 + $0x18] sm:$0xff]  }
 0x20a   :  { %v488_v24 = vpop.f32.mrf.mxu1 }
 0x20b   :  { %v489_v31 = vadd.f32 %v488_v24, %v2670_v25  ;;  %v509_v38 = vmax.f32 %v497_v27, 0.0  ;;  %v511_v1 = vpack.c.bf16 %v504_v63, %v503_v0  ;;  %2085 = vmatpush3.bf16.msra.mxu0 %v2302_v20 }
 0x20c   :  { %v2047_v29 = vpop.f32.mrf.mxu1  ;;  %2086 = vmatprep.subr.bf16.mxu0 %v2303_v21 }
 0x20d   :  { %v500_v32 = vadd.f32 %v2047_v29, %v2675_v26  ;;  %v507_v43 = vmax.f32 %v489_v31, 0.0 }
 0x20e   :  { %v491_v35 = vpop.f32.mrf.mxu1 }
 0x20f   :  { %v510_v39 = vmax.f32 %v500_v32, 0.0  ;;  %v492_v40 = vadd.f32 %v491_v35, %v2686_v30  ;;  %2087 = vmatpush3.bf16.msra.mxu0 %v2303_v21 }
 0x210   :  { %2088 = vmatprep.subr.bf16.mxu0 %v2304_v23 }
 0x211   :  { %v514_v44 = vpack.c.bf16 %v510_v39, %v509_v38  ;;  %v508_v45 = vmax.f32 %v492_v40, 0.0 }
 0x213   :  { %v513_v49 = vpack.c.bf16 %v508_v45, %v507_v43  ;;  %2048 = vmatprep.subr.bf16.mxu1 %v514_v44  ;;  %2089 = vmatpush3.bf16.msra.mxu0 %v2304_v23 }
 0x214   :  { %2049 = vmatpush3.bf16.msra.mxu1 %v514_v44  ;;  %2090 = vmatprep.subr.bf16.mxu0 %v2305_v42 }
 0x215   :  { %2050 = vmatprep.subr.bf16.mxu1 %v513_v49 }
 0x217   :  { %2091 = vmatpush3.bf16.msra.mxu0 %v2305_v42 }
 0x218   :  { %2051 = vmatpush3.bf16.msra.mxu1 %v513_v49  ;;  %2092 = vmatprep.subr.bf16.mxu0 %v2306_v56 }
 0x219   :  { %2052 = vmatprep.subr.bf16.mxu1 %v512_v62 }
 0x21b   :  { %2093 = vmatpush3.bf16.msra.mxu0 %v2306_v56 }
 0x21c   :  { %2053 = vmatpush3.bf16.msra.mxu1 %v512_v62  ;;  %2094 = vmatprep.subr.bf16.mxu0 %v2307_v55  ;;  %v1827_v62 = vld [vmem:[%s2879_s10] ss:$0 sm:$0xff] }
 0x21d   :  { %2054 = vmatprep.subr.bf16.mxu1 %v511_v1 }
 0x21f   :  { %2095 = vmatpush3.bf16.msra.mxu0 %v2307_v55 }
 0x220   :  { %2055 = vmatpush3.bf16.msra.mxu1 %v511_v1 }
 0x221   :  { %2060 = vmatprep.subr.bf16.mxu1 %v2292_v4 }
 0x223   :  { %2057 = vmatmul.mubr.msk.bf16.vlgmr.msra.gmra.mxu1 %vm515_vm11, %v2714_v5 }
 0x224   :  { %2061 = vmatpush3.bf16.msra.mxu1 %v2292_v4 }
 0x225   :  { %2062 = vmatprep.subr.bf16.mxu1 %v2293_v6 }
 0x228   :  { %2063 = vmatpush3.bf16.msra.mxu1 %v2293_v6 }
 0x229   :  { %2064 = vmatprep.subr.bf16.mxu1 %v2294_v9 }
 0x22c   :  { %2065 = vmatpush3.bf16.msra.mxu1 %v2294_v9 }
 0x22d   :  { %2066 = vmatprep.subr.bf16.mxu1 %v2295_v10 }
 0x230   :  { %2067 = vmatpush3.bf16.msra.mxu1 %v2295_v10 }
 0x231   :  { %2068 = vmatprep.subr.bf16.mxu1 %v2296_v13 }
 0x234   :  { %2069 = vmatpush3.bf16.msra.mxu1 %v2296_v13 }
 0x235   :  { %2070 = vmatprep.subr.bf16.mxu1 %v2297_v14 }
 0x238   :  { %2071 = vmatpush3.bf16.msra.mxu1 %v2297_v14 }
 0x239   :  { %2072 = vmatprep.subr.bf16.mxu1 %v2298_v15 }
 0x23c   :  { %2073 = vmatpush3.bf16.msra.mxu1 %v2298_v15 }
 0x23d   :  { %2074 = vmatprep.subr.bf16.mxu1 %v2299_v16 }
 0x240   :  { %2075 = vmatpush3.bf16.msra.mxu1 %v2299_v16 }
 0x2e3   :  { %v2058_v24 = vpop.f32.mrf.mxu1 }
 0x2e4   :  { %v573_v38 = vadd.f32 %v2058_v24, %v413_v58 }
 0x2e5   :  { %v556_v27 = vpop.f32.mrf.mxu1 }
 0x2e6   :  { %v571_v35 = vadd.f32 %v556_v27, %v411_v60 }
 0x2e7   :  { %v2059_v29 = vpop.f32.mrf.mxu1 }
 0x2e8   :  { %v574_v31 = vadd.f32 %v2059_v29, %v414_v59 }
 0x2e9   :  { %v559_v32 = vpop.f32.mrf.mxu1 }
 0x2ea   :  { %v572_v36 = vadd.f32 %v559_v32, %v412_v57  ;;  %v576_v40 = vpack.c.bf16 %v574_v31, %v573_v38 }
 0x2ec   :  { %v575_v39 = vpack.c.bf16 %v572_v36, %v571_v35 }
 0x2ee   :  { %2076 = vmatprep.mubr.bf16.mxu1 %v575_v39 }
 0x2ef   :  { %2077 = vmatmul.mubr.bf16.vlgmr.msra.gmra.mxu1 %v576_v40 }
 0x2f0   :  { %2104 = vmatprep.mubr.msk.bf16.mxu1 %vm425_vm2, %v2603_v37 }
 0x3af   :  { %v2078_v51 = vpop.f32.mrf.mxu1 }
 0x3b0   :  { %v691_v43 = vadd.f32 %v2078_v51, %v1818_v52 }
 0x3b1   :  { %v682_v57 = vpop.f32.mrf.mxu1 }
 0x3b2   :  { %v683_v59 = vadd.f32 %v1818_v52, %v682_v57  ;;  %v699_v50 = vmax.f32 %v691_v43, 0.0 }
 0x3b3   :  { %v2079_v58 = vpop.f32.mrf.mxu1 }
 0x3b4   :  { %v694_v60 = vadd.f32 %v2079_v58, %v1818_v52  ;;  %v697_v48 = vmax.f32 %v683_v59, 0.0 }
 0x3b5   :  { %v685_v44 = vpop.f32.mrf.mxu1 }
 0x3b6   :  { %v686_v45 = vadd.f32 %v1818_v52, %v685_v44  ;;  %v700_v47 = vmax.f32 %v694_v60, 0.0 }
 0x3b8   :  { %v698_v49 = vmax.f32 %v686_v45, 0.0  ;;  %v702_v54 = vpack.c.bf16 %v700_v47, %v699_v50  ;;  %v2310_v50 = vld [vmem:[#allocation7 + $0x68] sm:$0xff]  }
 0x3ba   :  { %v701_v53 = vpack.c.bf16 %v698_v49, %v697_v48  ;;  %v2308_v48 = vld [vmem:[#allocation7 + $0x78] sm:$0xff]   ;;  %v2309_v49 = vld [vmem:[#allocation7 + $0x70] sm:$0xff]  }
 0x3bc   :  { %2096 = vmatprep.mubr.bf16.mxu0 %v701_v53  ;;  %v2311_v53 = vld [vmem:[#allocation7 + $0x60] sm:$0xff]  }
 0x3bd   :  { %2097 = vmatmul.mubr.bf16.vlgmr.msra.gmra.mxu0 %v702_v54  ;;  %v2312_v54 = vld [vmem:[#allocation7 + $0x58] sm:$0xff]  }
 0x47d   :  { %v2098_v61 = vpop.f32.mrf.mxu0 }
 0x47e   :  { %v2734_v0 = vadd.f32 %v2098_v61, %v1827_v62  ;;  %v2313_v61 = vld [vmem:[#allocation7 + $0x50] sm:$0xff]  }
 0x47f   :  { %v808_v63 = vpop.f32.mrf.mxu0 }
 0x480   :  { %v2736_v2 = vadd.f32 %v1827_v62, %v808_v63  ;;  %v825_v6 = vmax.f32 %v2734_v0, 0.0  ;;  %v2315_v63 = vld [vmem:[#allocation7 + $0x40] sm:$0xff]  }
 0x481   :  { %v2099_v1 = vpop.f32.mrf.mxu0  ;;  %v1843_v0 = vld [vmem:[%s2877_s8 + $0x1] ss:$0 sm:$0xff] }
 0x482   :  { %v2738_v3 = vadd.f32 %v2099_v1, %v1827_v62  ;;  %v823_v13 = vmax.f32 %v2736_v2, 0.0  ;;  %v2316_v1 = vld [vmem:[#allocation8 + $0x78] sm:$0xff]   ;;  %v2323_v2 = vld [vmem:[#allocation8 + $0x40] sm:$0xff]  }
 0x483   :  { %v811_v4 = vpop.f32.mrf.mxu0  ;;  %2144 = vmatprep.subr.bf16.mxu0 %v2316_v1 }
 0x484   :  { %v826_v9 = vmax.f32 %v2738_v3, 0.0  ;;  %v2742_v10 = vadd.f32 %v1827_v62, %v811_v4  ;;  %v2314_v62 = vld [vmem:[#allocation7 + $0x48] sm:$0xff]   ;;  %v2317_v4 = vld [vmem:[#allocation8 + $0x70] sm:$0xff]   ;;  %2145 = vmatpush3.bf16.msra.mxu0 %v2316_v1 }
 0x485   :  { %2146 = vmatprep.subr.bf16.mxu0 %v2317_v4  ;;  %v2322_v3 = vld [vmem:[#allocation8 + $0x48] sm:$0xff]   ;;  %v2325_v1 = vld [vmem:[#allocation7 + $0xb0] sm:$0xff]  }
 0x486   :  { %v828_v14 = vpack.c.bf16 %v826_v9, %v825_v6  ;;  %v824_v15 = vmax.f32 %v2742_v10, 0.0 }
 0x488   :  { %v827_v16 = vpack.c.bf16 %v824_v15, %v823_v13  ;;  %2100 = vmatprep.subr.bf16.mxu1 %v828_v14  ;;  %2147 = vmatpush3.bf16.msra.mxu0 %v2317_v4  ;;  %v2326_v4 = vld [vmem:[#allocation7 + $0xa8] sm:$0xff]  }
 0x489   :  { %2101 = vmatpush3.bf16.msra.mxu1 %v828_v14  ;;  %v2318_v14 = vld [vmem:[#allocation8 + $0x68] sm:$0xff]  }
 0x48a   :  { %2102 = vmatprep.subr.bf16.mxu1 %v827_v16  ;;  %2148 = vmatprep.subr.bf16.mxu0 %v2318_v14 }
 0x48c   :  { %2149 = vmatpush3.bf16.msra.mxu0 %v2318_v14  ;;  %v2327_v14 = vld [vmem:[#allocation7 + $0xa0] sm:$0xff]  }
 0x48d   :  { %2103 = vmatpush3.bf16.msra.mxu1 %v827_v16  ;;  %v2319_v16 = vld [vmem:[#allocation8 + $0x60] sm:$0xff]  }
 0x48e   :  { %2150 = vmatprep.subr.bf16.mxu0 %v2319_v16 }
 0x490   :  { %2105 = vmatmul.mubr.msk.bf16.vlgmr.msra.gmra.mxu1 %vm425_vm2, %v2634_v7  ;;  %2151 = vmatpush3.bf16.msra.mxu0 %v2319_v16 }
 0x491   :  { %2108 = vmatprep.mubr.msk.bf16.mxu1 %vm425_vm2, %v2636_v8 }
 0x498   :  { %2109 = vmatmul.mubr.msk.bf16.gmra.mxu1 %vm425_vm2, %v2644_v11 }
 0x499   :  { %2120 = vmatprep.mubr.msk.bf16.mxu1 %vm515_vm11, %v2658_v17 }
 0x550   :  { %v2106_v18 = vpop.f32.mrf.mxu1 }
 0x551   :  { %v872_v42 = vadd.f32 %v2106_v18, %v2693_v34  ;;  %v2320_v18 = vld [vmem:[#allocation8 + $0x58] sm:$0xff]  }
 0x552   :  { %v863_v19 = vpop.f32.mrf.mxu1  ;;  %2152 = vmatprep.subr.bf16.mxu0 %v2320_v18 }
 0x553   :  { %v896_v59 = vmax.f32 %v872_v42, 0.0  ;;  %v864_v60 = vadd.f32 %v863_v19, %v2706_v46  ;;  %2153 = vmatpush3.bf16.msra.mxu0 %v2320_v18 }
 0x554   :  { %v2107_v20 = vpop.f32.mrf.mxu1 }
 0x555   :  { %v875_v36 = vadd.f32 %v2107_v20, %v2681_v28  ;;  %v894_v45 = vmax.f32 %v864_v60, 0.0 }
 0x556   :  { %v866_v21 = vpop.f32.mrf.mxu1 }
 0x557   :  { %v897_v57 = vmax.f32 %v875_v36, 0.0  ;;  %v867_v52 = vadd.f32 %v866_v21, %v2700_v41  ;;  %v2321_v36 = vld [vmem:[#allocation8 + $0x50] sm:$0xff]  }
 0x558   :  { %v2110_v23 = vpop.f32.mrf.mxu1  ;;  %2154 = vmatprep.subr.bf16.mxu0 %v2321_v36 }
 0x559   :  { %v888_v27 = vadd.f32 %v2110_v23, %v2665_v22  ;;  %v903_v43 = vpack.c.bf16 %v897_v57, %v896_v59  ;;  %v895_v44 = vmax.f32 %v867_v52, 0.0  ;;  %2155 = vmatpush3.bf16.msra.mxu0 %v2321_v36 }
 0x55a   :  { %v879_v24 = vpop.f32.mrf.mxu1  ;;  %2156 = vmatprep.subr.bf16.mxu0 %v2322_v3 }
 0x55b   :  { %v880_v31 = vadd.f32 %v879_v24, %v2670_v25  ;;  %v900_v38 = vmax.f32 %v888_v27, 0.0  ;;  %v902_v47 = vpack.c.bf16 %v895_v44, %v894_v45 }
 0x55c   :  { %v2111_v29 = vpop.f32.mrf.mxu1 }
 0x55d   :  { %v891_v32 = vadd.f32 %v2111_v29, %v2675_v26  ;;  %v898_v56 = vmax.f32 %v880_v31, 0.0  ;;  %2157 = vmatpush3.bf16.msra.mxu0 %v2322_v3 }
 0x55e   :  { %v882_v35 = vpop.f32.mrf.mxu1  ;;  %2158 = vmatprep.subr.bf16.mxu0 %v2323_v2 }
 0x55f   :  { %v901_v39 = vmax.f32 %v891_v32, 0.0  ;;  %v883_v40 = vadd.f32 %v882_v35, %v2686_v30 }
 0x561   :  { %v905_v55 = vpack.c.bf16 %v901_v39, %v900_v38  ;;  %v899_v51 = vmax.f32 %v883_v40, 0.0  ;;  %2159 = vmatpush3.bf16.msra.mxu0 %v2323_v2 }
 0x563   :  { %v904_v58 = vpack.c.bf16 %v899_v51, %v898_v56  ;;  %2112 = vmatprep.subr.bf16.mxu1 %v905_v55 }
 0x564   :  { %2113 = vmatpush3.bf16.msra.mxu1 %v905_v55 }
 0x565   :  { %2114 = vmatprep.subr.bf16.mxu1 %v904_v58 }
 0x568   :  { %2115 = vmatpush3.bf16.msra.mxu1 %v904_v58  ;;  %v1853_v58 = vld [vmem:[%s2879_s10 + $0x1] ss:$0 sm:$0xff] }
 0x569   :  { %2116 = vmatprep.subr.bf16.mxu1 %v903_v43 }
 0x56c   :  { %2117 = vmatpush3.bf16.msra.mxu1 %v903_v43 }
 0x56d   :  { %2118 = vmatprep.subr.bf16.mxu1 %v902_v47 }
 0x570   :  { %2119 = vmatpush3.bf16.msra.mxu1 %v902_v47 }
 0x571   :  { %2124 = vmatprep.subr.bf16.mxu1 %v2308_v48 }
 0x573   :  { %2121 = vmatmul.mubr.msk.bf16.vlgmr.msra.gmra.mxu1 %vm515_vm11, %v2714_v5 }
 0x574   :  { %2125 = vmatpush3.bf16.msra.mxu1 %v2308_v48 }
 0x575   :  { %2126 = vmatprep.subr.bf16.mxu1 %v2309_v49 }
 0x578   :  { %2127 = vmatpush3.bf16.msra.mxu1 %v2309_v49 }
 0x579   :  { %2128 = vmatprep.subr.bf16.mxu1 %v2310_v50 }
 0x57c   :  { %2129 = vmatpush3.bf16.msra.mxu1 %v2310_v50 }
 0x57d   :  { %2130 = vmatprep.subr.bf16.mxu1 %v2311_v53 }
 0x580   :  { %2131 = vmatpush3.bf16.msra.mxu1 %v2311_v53 }
 0x581   :  { %2132 = vmatprep.subr.bf16.mxu1 %v2312_v54 }
 0x584   :  { %2133 = vmatpush3.bf16.msra.mxu1 %v2312_v54 }
 0x585   :  { %2134 = vmatprep.subr.bf16.mxu1 %v2313_v61 }
 0x588   :  { %2135 = vmatpush3.bf16.msra.mxu1 %v2313_v61 }
 0x589   :  { %2136 = vmatprep.subr.bf16.mxu1 %v2314_v62 }
 0x58c   :  { %2137 = vmatpush3.bf16.msra.mxu1 %v2314_v62 }
 0x58d   :  { %2138 = vmatprep.subr.bf16.mxu1 %v2315_v63 }
 0x590   :  { %2139 = vmatpush3.bf16.msra.mxu1 %v2315_v63  ;;  %v2324_v63 = vld [vmem:[#allocation7 + $0xb8] sm:$0xff]  }
 0x591   :  { %2188 = vmatprep.subr.bf16.mxu0 %v2324_v63 }
 0x633   :  { %v2122_v19 = vpop.f32.mrf.mxu1 }
 0x634   :  { %v957_v31 = vadd.f32 %v2122_v19, %v825_v6 }
 0x635   :  { %v940_v20 = vpop.f32.mrf.mxu1 }
 0x636   :  { %v955_v27 = vadd.f32 %v940_v20, %v823_v13 }
 0x637   :  { %v2123_v21 = vpop.f32.mrf.mxu1 }
 0x638   :  { %v958_v23 = vadd.f32 %v2123_v21, %v826_v9 }
 0x639   :  { %v943_v24 = vpop.f32.mrf.mxu1 }
 0x63a   :  { %v956_v29 = vadd.f32 %v943_v24, %v824_v15  ;;  %v960_v35 = vpack.c.bf16 %v958_v23, %v957_v31 }
 0x63c   :  { %v959_v32 = vpack.c.bf16 %v956_v29, %v955_v27 }
 0x63e   :  { %2140 = vmatprep.mubr.bf16.mxu1 %v959_v32 }
 0x63f   :  { %2141 = vmatmul.mubr.bf16.vlgmr.msra.gmra.mxu1 %v960_v35 }
 0x640   :  { %2168 = vmatprep.mubr.msk.bf16.mxu1 %vm425_vm2, %v2603_v37 }
 0x6ff   :  { %v2142_v9 = vpop.f32.mrf.mxu1 }
 0x700   :  { %v1077_v38 = vadd.f32 %v2142_v9, %v1843_v0 }
 0x701   :  { %v1068_v10 = vpop.f32.mrf.mxu1 }
 0x702   :  { %v1069_v13 = vadd.f32 %v1843_v0, %v1068_v10  ;;  %v1085_v55 = vmax.f32 %v1077_v38, 0.0  ;;  %v2333_v38 = vld [vmem:[#allocation8 + $0xb0] sm:$0xff]  }
 0x703   :  { %v2143_v6 = vpop.f32.mrf.mxu1 }
 0x704   :  { %v1080_v15 = vadd.f32 %v2143_v6, %v1843_v0  ;;  %v1083_v42 = vmax.f32 %v1069_v13, 0.0 }
 0x705   :  { %v1071_v37 = vpop.f32.mrf.mxu1 }
 0x706   :  { %v1072_v39 = vadd.f32 %v1843_v0, %v1071_v37  ;;  %v1086_v40 = vmax.f32 %v1080_v15, 0.0  ;;  %v2332_v15 = vld [vmem:[#allocation8 + $0xb8] sm:$0xff]   ;;  %v2334_v37 = vld [vmem:[#allocation8 + $0xa8] sm:$0xff]  }
 0x708   :  { %v1084_v56 = vmax.f32 %v1072_v39, 0.0  ;;  %v1088_v57 = vpack.c.bf16 %v1086_v40, %v1085_v55  ;;  %v2336_v39 = vld [vmem:[#allocation8 + $0x98] sm:$0xff]  }
 0x70a   :  { %v1087_v51 = vpack.c.bf16 %v1084_v56, %v1083_v42 }
 0x70c   :  { %2160 = vmatprep.mubr.bf16.mxu0 %v1087_v51 }
 0x70d   :  { %2161 = vmatmul.mubr.bf16.vlgmr.msra.gmra.mxu0 %v1088_v57 }
 0x70e   :  { %2189 = vmatpush3.bf16.msra.mxu0 %v2324_v63 }
 0x70f   :  { %2190 = vmatprep.subr.bf16.mxu0 %v2325_v1 }
 0x712   :  { %2191 = vmatpush3.bf16.msra.mxu0 %v2325_v1 }
 0x713   :  { %2192 = vmatprep.subr.bf16.mxu0 %v2326_v4 }
 0x716   :  { %2193 = vmatpush3.bf16.msra.mxu0 %v2326_v4 }
 0x717   :  { %2194 = vmatprep.subr.bf16.mxu0 %v2327_v14 }
 0x71a   :  { %2195 = vmatpush3.bf16.msra.mxu0 %v2327_v14 }
 0x7cd   :  { %v2162_v52 = vpop.f32.mrf.mxu0 }
 0x7ce   :  { %v2788_v60 = vadd.f32 %v2162_v52, %v1853_v58 }
 0x7cf   :  { %v1196_v59 = vpop.f32.mrf.mxu0 }
 0x7d0   :  { %v2790_v44 = vadd.f32 %v1853_v58, %v1196_v59  ;;  %v1213_v48 = vmax.f32 %v2788_v60, 0.0  ;;  %v1869_v60 = vld [vmem:[%s2877_s8 + $0x2] ss:$0 sm:$0xff] }
 0x7d1   :  { %v2163_v43 = vpop.f32.mrf.mxu0 }
 0x7d2   :  { %v2792_v45 = vadd.f32 %v2163_v43, %v1853_v58  ;;  %v1211_v53 = vmax.f32 %v2790_v44, 0.0 }
 0x7d3   :  { %v1199_v47 = vpop.f32.mrf.mxu0 }
 0x7d4   :  { %v1214_v49 = vmax.f32 %v2792_v45, 0.0  ;;  %v2796_v50 = vadd.f32 %v1853_v58, %v1199_v47  ;;  %v2337_v47 = vld [vmem:[#allocation8 + $0x90] sm:$0xff]   ;;  %v2339_v45 = vld [vmem:[#allocation8 + $0x80] sm:$0xff]  }
 0x7d6   :  { %v1216_v54 = vpack.c.bf16 %v1214_v49, %v1213_v48  ;;  %v1212_v61 = vmax.f32 %v2796_v50, 0.0 }
 0x7d8   :  { %v1215_v62 = vpack.c.bf16 %v1212_v61, %v1211_v53  ;;  %2164 = vmatprep.subr.bf16.mxu1 %v1216_v54 }
 0x7d9   :  { %2165 = vmatpush3.bf16.msra.mxu1 %v1216_v54  ;;  %v2338_v54 = vld [vmem:[#allocation8 + $0x88] sm:$0xff]  }
 0x7da   :  { %2166 = vmatprep.subr.bf16.mxu1 %v1215_v62 }
 0x7dd   :  { %2167 = vmatpush3.bf16.msra.mxu1 %v1215_v62 }
 0x7e0   :  { %2169 = vmatmul.mubr.msk.bf16.vlgmr.msra.gmra.mxu1 %vm425_vm2, %v2634_v7  ;;  %v2328_v7 = vld [vmem:[#allocation7 + $0x98] sm:$0xff]  }
 0x7e1   :  { %2172 = vmatprep.mubr.msk.bf16.mxu1 %vm425_vm2, %v2636_v8  ;;  %2196 = vmatprep.subr.bf16.mxu0 %v2328_v7 }
 0x7e2   :  { %2197 = vmatpush3.bf16.msra.mxu0 %v2328_v7 }
 0x7e8   :  { %2173 = vmatmul.mubr.msk.bf16.gmra.mxu1 %vm425_vm2, %v2644_v11 }
 0x7e9   :  { %2184 = vmatprep.mubr.msk.bf16.mxu1 %vm515_vm11, %v2658_v17 }
 0x8a0   :  { %v2170_v8 = vpop.f32.mrf.mxu1 }
 0x8a1   :  { %v1260_v36 = vadd.f32 %v2170_v8, %v2693_v34  ;;  %v2329_v34 = vld [vmem:[#allocation7 + $0x90] sm:$0xff]  }
 0x8a2   :  { %v1251_v11 = vpop.f32.mrf.mxu1  ;;  %2198 = vmatprep.subr.bf16.mxu0 %v2329_v34 }
 0x8a3   :  { %2199 = vmatpush3.bf16.msra.mxu0 %v2329_v34 }
 0x8a4   :  { %v2171_v16 = vpop.f32.mrf.mxu1 }
 0x8a5   :  { %v1263_v29 = vadd.f32 %v2171_v16, %v2681_v28 }
 0x8a6   :  { %v1254_v18 = vpop.f32.mrf.mxu1 }
 0x8a7   :  { %v1285_v10 = vmax.f32 %v1263_v29, 0.0 }
 0x8a8   :  { %v2174_v17 = vpop.f32.mrf.mxu1 }
 0x8a9   :  { %v1276_v20 = vadd.f32 %v2174_v17, %v2665_v22  ;;  %v1255_v22 = vadd.f32 %v1254_v18, %v2700_v41  ;;  %v2330_v41 = vld [vmem:[#allocation7 + $0x88] sm:$0xff]   ;;  %v1879_v18 = vld [vmem:[%s2879_s10 + $0x2] ss:$0 sm:$0xff] }
 0x8aa   :  { %v1267_v19 = vpop.f32.mrf.mxu1  ;;  %2200 = vmatprep.subr.bf16.mxu0 %v2330_v41 }
 0x8ab   :  { %v1268_v23 = vadd.f32 %v1267_v19, %v2670_v25  ;;  %v1288_v31 = vmax.f32 %v1276_v20, 0.0  ;;  %v1284_v25 = vmax.f32 %v1260_v36, 0.0  ;;  %v1283_v6 = vmax.f32 %v1255_v22, 0.0  ;;  %2201 = vmatpush3.bf16.msra.mxu0 %v2330_v41  ;;  %v2340_v22 = vld [vmem:[#allocation10 + $0x38] sm:$0xff]  }
 0x8ac   :  { %v2175_v21 = vpop.f32.mrf.mxu1 }
 0x8ad   :  { %v1279_v24 = vadd.f32 %v2175_v21, %v2675_v26  ;;  %v1286_v3 = vmax.f32 %v1268_v23, 0.0  ;;  %v1252_v26 = vadd.f32 %v1251_v11, %v2706_v46  ;;  %v1291_v28 = vpack.c.bf16 %v1285_v10, %v1284_v25  ;;  %v2331_v46 = vld [vmem:[#allocation7 + $0x80] sm:$0xff]   ;;  %v1790_v23 = vld [vmem:[%s2873_s4] ss:$0 sm:$0xff] }
 0x8ae   :  { %v1270_v27 = vpop.f32.mrf.mxu1  ;;  %2202 = vmatprep.subr.bf16.mxu0 %v2331_v46  ;;  %vm200_vm15 = vcmp.eq.s32.totalorder %v2649_v12, %v1790_v23  ;;  %v2342_v12 = vld [vmem:[#allocation10 + $0x28] sm:$0xff]   ;;  %v2343_v25 = vld [vmem:[#allocation10 + $0x20] sm:$0xff]  }
 0x8af   :  { %v1289_v32 = vmax.f32 %v1279_v24, 0.0  ;;  %v1271_v35 = vadd.f32 %v1270_v27, %v2686_v30  ;;  %v1282_v13 = vmax.f32 %v1252_v26, 0.0  ;;  %2203 = vmatpush3.bf16.msra.mxu0 %v2331_v46  ;;  %v2344_v26 = vld [vmem:[#allocation10 + $0x18] sm:$0xff]  }
 0x8b0   :  { %2228 = vmatprep.subr.bf16.mxu0 %v2464_v33 }
 0x8b1   :  { %v1293_v2 = vpack.c.bf16 %v1289_v32, %v1288_v31  ;;  %v1287_v9 = vmax.f32 %v1271_v35, 0.0  ;;  %v1290_v30 = vpack.c.bf16 %v1283_v6, %v1282_v13  ;;  %v2346_v6 = vld [vmem:[#allocation10 + $0x8] sm:$0xff]   ;;  %v2347_v13 = vld [vmem:[#allocation10] sm:$0xff]  }
 0x8b3   :  { %v1292_v0 = vpack.c.bf16 %v1287_v9, %v1286_v3  ;;  %2176 = vmatprep.subr.bf16.mxu1 %v1293_v2 }
 0x8b4   :  { %2177 = vmatpush3.bf16.msra.mxu1 %v1293_v2  ;;  %v201_v2 = vsel %vm200_vm15, 1.0, %v2464_v33 }
 0x8b5   :  { %2178 = vmatprep.subr.bf16.mxu1 %v1292_v0  ;;  %v202_v10 = vpack.c.bf16 %v201_v2, %v201_v2 }
 0x8b8   :  { %2179 = vmatpush3.bf16.msra.mxu1 %v1292_v0  ;;  %v2341_v0 = vld [vmem:[#allocation10 + $0x30] sm:$0xff]  }
 0x8b9   :  { %2180 = vmatprep.subr.bf16.mxu1 %v1291_v28 }
 0x8bc   :  { %2181 = vmatpush3.bf16.msra.mxu1 %v1291_v28  ;;  %v2345_v28 = vld [vmem:[#allocation10 + $0x10] sm:$0xff]  }
 0x8bd   :  { %2182 = vmatprep.subr.bf16.mxu1 %v1290_v30 }
 0x8c0   :  { %2183 = vmatpush3.bf16.msra.mxu1 %v1290_v30 }
 0x8c1   :  { %2208 = vmatprep.subr.bf16.mxu1 %v2332_v15 }
 0x8c3   :  { %2185 = vmatmul.mubr.msk.bf16.vlgmr.msra.gmra.mxu1 %vm515_vm11, %v2714_v5  ;;  %v2335_v5 = vld [vmem:[#allocation8 + $0xa0] sm:$0xff]  }
 0x8c4   :  { %2209 = vmatpush3.bf16.msra.mxu1 %v2332_v15 }
 0x8c5   :  { %2210 = vmatprep.subr.bf16.mxu1 %v2333_v38 }
 0x8c8   :  { %2211 = vmatpush3.bf16.msra.mxu1 %v2333_v38  ;;  %v1889_v38 = vld [vmem:[%s2881_s12] ss:$0 sm:$0xff] }
 0x8c9   :  { %2212 = vmatprep.subr.bf16.mxu1 %v2334_v37 }
 0x8cc   :  { %2213 = vmatpush3.bf16.msra.mxu1 %v2334_v37 }
 0x8cd   :  { %2214 = vmatprep.subr.bf16.mxu1 %v2335_v5 }
 0x8d0   :  { %2215 = vmatpush3.bf16.msra.mxu1 %v2335_v5  ;;  %v1898_v5 = vld [vmem:[%s2882_s13] ss:$0 sm:$0xff] }
 0x8d1   :  { %2216 = vmatprep.subr.bf16.mxu1 %v2336_v39 }
 0x8d4   :  { %2217 = vmatpush3.bf16.msra.mxu1 %v2336_v39 }
 0x8d5   :  { %2218 = vmatprep.subr.bf16.mxu1 %v2337_v47 }
 0x8d8   :  { %2219 = vmatpush3.bf16.msra.mxu1 %v2337_v47 }
 0x8d9   :  { %2220 = vmatprep.subr.bf16.mxu1 %v2338_v54 }
 0x8dc   :  { %2221 = vmatpush3.bf16.msra.mxu1 %v2338_v54 }
 0x8dd   :  { %2222 = vmatprep.subr.bf16.mxu1 %v2339_v45 }
 0x8e0   :  { %2223 = vmatpush3.bf16.msra.mxu1 %v2339_v45 }
 0x983   :  { %v2186_v40 = vpop.f32.mrf.mxu1 }
 0x984   :  { %v1345_v58 = vadd.f32 %v2186_v40, %v1213_v48 }
 0x985   :  { %v1328_v42 = vpop.f32.mrf.mxu1 }
 0x986   :  { %v1343_v57 = vadd.f32 %v1328_v42, %v1211_v53 }
 0x987   :  { %v2187_v56 = vpop.f32.mrf.mxu1 }
 0x988   :  { %v1346_v55 = vadd.f32 %v2187_v56, %v1214_v49 }
 0x989   :  { %v1331_v51 = vpop.f32.mrf.mxu1 }
 0x98a   :  { %v1344_v52 = vadd.f32 %v1331_v51, %v1212_v61  ;;  %v1348_v43 = vpack.c.bf16 %v1346_v55, %v1345_v58  ;;  %v1899_v51 = vld [vmem:[#allocation2] ss:$0 sm:$0xff] }
 0x98c   :  { %v1347_v59 = vpack.c.bf16 %v1344_v52, %v1343_v57 }
 0x98e   :  { %2204 = vmatprep.mubr.bf16.mxu0 %v1347_v59 }
 0x98f   :  { %2205 = vmatmul.mubr.bf16.vlgmr.msra.gmra.mxu0 %v1348_v43 }
 0x990   :  { %2232 = vmatprep.mubr.msk.bf16.mxu0 %vm2465_vm14, %v2464_v33 }
 0xa4f   :  { %v2206_v44 = vpop.f32.mrf.mxu0 }
 0xa50   :  { %v1465_v61 = vadd.f32 %v2206_v44, %v1869_v60 }
 0xa51   :  { %v1456_v49 = vpop.f32.mrf.mxu0 }
 0xa52   :  { %v1457_v50 = vadd.f32 %v1869_v60, %v1456_v49  ;;  %v1473_v7 = vmax.f32 %v1465_v61, 0.0 }
 0xa53   :  { %v2207_v48 = vpop.f32.mrf.mxu0 }
 0xa54   :  { %v1468_v53 = vadd.f32 %v2207_v48, %v1869_v60  ;;  %v1471_v4 = vmax.f32 %v1457_v50, 0.0 }
 0xa55   :  { %v1459_v62 = vpop.f32.mrf.mxu0 }
 0xa56   :  { %v1460_v63 = vadd.f32 %v1869_v60, %v1459_v62  ;;  %v1474_v1 = vmax.f32 %v1468_v53, 0.0 }
 0xa58   :  { %v1472_v14 = vmax.f32 %v1460_v63, 0.0  ;;  %v1476_v11 = vpack.c.bf16 %v1474_v1, %v1473_v7 }
 0xa5a   :  { %v1475_v8 = vpack.c.bf16 %v1472_v14, %v1471_v4 }
 0xa5c   :  { %2224 = vmatprep.mubr.bf16.mxu1 %v1475_v8 }
 0xa5d   :  { %2225 = vmatmul.mubr.bf16.vlgmr.msra.gmra.mxu1 %v1476_v11 }
 0xb1d   :  { %v2226_v16 = vpop.f32.mrf.mxu1 }
 0xb1e   :  { %v1593_v19 = vadd.f32 %v2226_v16, %v1879_v18 }
 0xb1f   :  { %v1584_v17 = vpop.f32.mrf.mxu1 }
 0xb20   :  { %v1601_v27 = vmax.f32 %v1593_v19, 0.0  ;;  %v1585_v29 = vadd.f32 %v1879_v18, %v1584_v17 }
 0xb21   :  { %v2227_v20 = vpop.f32.mrf.mxu1 }
 0xb22   :  { %v1596_v21 = vadd.f32 %v2227_v20, %v1879_v18  ;;  %v1599_v3 = vmax.f32 %v1585_v29, 0.0 }
 0xb23   :  { %v1587_v24 = vpop.f32.mrf.mxu1 }
 0xb24   :  { %v1602_v31 = vmax.f32 %v1596_v21, 0.0  ;;  %v1588_v32 = vadd.f32 %v1879_v18, %v1587_v24 }
 0xb26   :  { %v1604_v35 = vpack.c.bf16 %v1602_v31, %v1601_v27  ;;  %v1600_v36 = vmax.f32 %v1588_v32, 0.0 }
 0xb28   :  { %2229 = vmatpush3.bf16.msra.mxu0 %v1604_v35  ;;  %v1603_v9 = vpack.c.bf16 %v1600_v36, %v1599_v3 }
 0xb29   :  { %2230 = vmatprep.subr.bf16.mxu0 %v2464_v33 }
 0xb2c   :  { %2231 = vmatpush3.bf16.msra.mxu0 %v1603_v9 }
 0xb2d   :  { %2236 = vmatprep.subr.bf16.mxu0 %v2464_v33 }
 0xb2f   :  { %2233 = vmatmul.mubr.msk.bf16.vlgmr.msra.gmra.mxu0 %vm425_vm2, %v202_v10 }
 0xb30   :  { %2237 = vmatpush3.bf16.msra.mxu0 %v2340_v22  ;;  %2252 = vmatprep.mubr.msk.bf16.mxu0 %vm2465_vm14, %v2464_v33 }
 0xb31   :  { %2238 = vmatprep.subr.bf16.mxu0 %v2464_v33 }
 0xb34   :  { %2239 = vmatpush3.bf16.msra.mxu0 %v2341_v0 }
 0xb35   :  { %2240 = vmatprep.subr.bf16.mxu0 %v2464_v33 }
 0xb38   :  { %2241 = vmatpush3.bf16.msra.mxu0 %v2342_v12 }
 0xb39   :  { %2242 = vmatprep.subr.bf16.mxu0 %v2464_v33 }
 0xb3c   :  { %2243 = vmatpush3.bf16.msra.mxu0 %v2343_v25 }
 0xb3d   :  { %2244 = vmatprep.subr.bf16.mxu0 %v2464_v33 }
 0xb40   :  { %2245 = vmatpush3.bf16.msra.mxu0 %v2344_v26 }
 0xb41   :  { %2246 = vmatprep.subr.bf16.mxu0 %v2464_v33 }
 0xb44   :  { %2247 = vmatpush3.bf16.msra.mxu0 %v2345_v28 }
 0xb45   :  { %2248 = vmatprep.subr.bf16.mxu0 %v2464_v33 }
 0xb48   :  { %2249 = vmatpush3.bf16.msra.mxu0 %v2346_v6 }
 0xb49   :  { %2250 = vmatprep.subr.bf16.mxu0 %v2464_v33 }
 0xb4c   :  { %2251 = vmatpush3.bf16.msra.mxu0 %v2347_v13 }
 0xbef   :  { %v1642_v30 = vpop.f32.mrf.mxu0 }
 0xbf0   :  { %v1648_v34 = vpack.c.bf16 %v1642_v30, %v1642_v30 }
 0xbf1   :  { %v2234_v41 = vpop.f32.mrf.mxu0 }
 0xbf2   :  { %2253 = vmatmul.mubr.bf16.vlgmr.msra.gmra.mxu0 %v1648_v34 }
 0xbf3   :  { %v1645_v46 = vpop.f32.mrf.mxu0 }
 0xbf5   :  { %v2235_v15 = vpop.f32.mrf.mxu0 }
 0xcb2   :  { %v1754_v37 = vpop.f32.mrf.mxu0 }
 0xcb3   :  { %v1755_v39 = vadd.f32 %v1889_v38, %v1754_v37 }
 0xcb4   :  { %v2254_v40 = vpop.f32.mrf.mxu0 }
 0xcb5   :  { %v1767_v33 = vmul.f32 %v1898_v5, %v1755_v39 }
 0xcb6   :  { %v1757_v42 = vpop.f32.mrf.mxu0 }
 0xcb7   :  { %v1769_v56 = vsel %vm1768_vm0, %v1767_v33, 0.0 }
 0xcb8   :  { %v2255_v55 = vpop.f32.mrf.mxu0  ;;  %1770 = vadd.xlane.f32.xlu0 %v1769_v56 }
 0xd41   :  { %v1771_v57 = vpop.xlane.xlu0 %1770 }
 0xd42   :  { %v1779_v52 = vadd.f32 %v1899_v51, %v1771_v57 }
 0xd44   :  { %1781 = vst.msk [vmem:[%s2884_s15] sm:$0x3] %vm1780_vm1, %v1779_v52 }
 0xd45   :  { %1786 = vsyncpa [#allocation4], 1 }
 0xd46   :  { %1787 = vsyncpa [#allocation6], 1 }
 0xd47   :  { %1788 = vsyncpa [#allocation9], 1 }

</bundles_post_ra>
